<compile_context>
chip_gen: v5e
topology: v5e:2x2
jax: 0.10.0
libtpu: 0.0.40
codegen_flags: <defaults>
</compile_context>

<pallas_src>
import jax
import jax.numpy as jnp
from jax.experimental import pallas as pl
from jax.experimental.pallas import tpu as pltpu


def _conditional_kernel(a_ref, o_ref, w1a_ref, w1b_ref, b1_ref, g_ref,
                        beta_ref, w2_ref, b2_ref, out_ref):
    a = a_ref[...]                                   # (TB, D) bf16
    o = o_ref[...]                                   # (TB, D) bf16

    # Linear 1, concat-free:  h = a @ W1[:D] + o @ W1[D:] + b1   (MXU, f32 acc)
    h = jnp.dot(a, w1a_ref[...], preferred_element_type=jnp.float32)
    h = h + jnp.dot(o, w1b_ref[...], preferred_element_type=jnp.float32)
    h = h + b1_ref[...]

    # LayerNorm over features: single-pass moments, gamma folded into scale.
    mu = jnp.mean(h, axis=-1, keepdims=True)
    ms = jnp.mean(h * h, axis=-1, keepdims=True)
    var = ms - mu * mu
    scale = g_ref[...] * jax.lax.rsqrt(var + 1e-5)   # eps matches nn.LayerNorm
    h = (h - mu) * scale + beta_ref[...]

    # ReLU (Dropout(0.5) is identity in eval mode).
    h = jnp.maximum(h, 0.0)

    # Linear 2: bf16 operands, f32 accumulation.
    y = jnp.dot(h.astype(jnp.bfloat16), w2_ref[...],
                preferred_element_type=jnp.float32)
    y = y + b2_ref[...]

    # Sigmoid gate applied to `a` (f32 elementwise math).
    out_ref[...] = (jax.nn.sigmoid(y) * a.astype(jnp.float32)).astype(out_ref.dtype)


def conditional_forward(a, o, params, *, block_b=128):
    """a, o: (B, D) float32.  params: dict of w1 (2D,H), b1, gamma, beta, w2 (H,D), b2."""
    B, D = a.shape
    H = params["w1"].shape[1]
    assert params["w1"].shape == (2 * D, H)
    assert params["w2"].shape == (H, D)

    # bf16 MXU operands (accumulation stays f32 inside the kernel).
    a_bf = a.astype(jnp.bfloat16)
    o_bf = o.astype(jnp.bfloat16)
    w1a = params["w1"][:D].astype(jnp.bfloat16)      # rows multiplying `a`
    w1b = params["w1"][D:].astype(jnp.bfloat16)      # rows multiplying `o`
    w2 = params["w2"].astype(jnp.bfloat16)
    b1 = params["b1"].astype(jnp.float32)
    gamma = params["gamma"].astype(jnp.float32)
    beta = params["beta"].astype(jnp.float32)
    b2 = params["b2"].astype(jnp.float32)

    # Pad the batch so the grid covers it exactly with tile-aligned blocks.
    tb = block_b
    n_blocks = pl.cdiv(B, tb)
    b_pad = n_blocks * tb
    if b_pad != B:
        pad = ((0, b_pad - B), (0, 0))
        a_bf = jnp.pad(a_bf, pad)
        o_bf = jnp.pad(o_bf, pad)

    flops = 2 * b_pad * H * (2 * D + D)              # two MXU matmuls
    bytes_accessed = (2 * b_pad * D * 2              # a, o (bf16)
                      + b_pad * D * 4                # out (f32)
                      + (2 * D * H + H * D) * 2      # weights (bf16)
                      + (3 * H + D) * 4)             # biases / LN affine (f32)
    cost = pl.CostEstimate(flops=flops,
                           transcendentals=b_pad * (D + 1),
                           bytes_accessed=bytes_accessed)

    act_spec = pl.BlockSpec((tb, D), lambda i: (i, 0))
    const = lambda shape: pl.BlockSpec(shape, lambda i: (0,) * len(shape))

    out = pl.pallas_call(
        _conditional_kernel,
        out_shape=jax.ShapeDtypeStruct((b_pad, D), jnp.float32),
        grid_spec=pltpu.PrefetchScalarGridSpec(
            num_scalar_prefetch=0,
            grid=(n_blocks,),
            in_specs=[
                act_spec,              # a  (batch-tiled, double-buffered)
                act_spec,              # o
                const((D, H)),         # w1a  (VMEM-resident across steps)
                const((D, H)),         # w1b
                const((1, H)),         # b1
                const((1, H)),         # gamma
                const((1, H)),         # beta
                const((H, D)),         # w2
                const((1, D)),         # b2
            ],
            out_specs=act_spec,
        ),
        compiler_params=pltpu.CompilerParams(
            dimension_semantics=("parallel",),       # megacore-shardable on v7x
            vmem_limit_bytes=64 * 1024 * 1024,
        ),
        cost_estimate=cost,
    )(a_bf, o_bf, w1a, w1b, b1, gamma, beta, w2, b2)

    return out[:B] if b_pad != B else out


def reference_forward(a, o, params):
    """Plain-JAX f32 reference for correctness check."""
    x = jnp.concatenate([a, o], axis=1)
    h = x @ params["w1"] + params["b1"]
    mu = jnp.mean(h, axis=-1, keepdims=True)
    var = jnp.mean((h - mu) ** 2, axis=-1, keepdims=True)
    h = (h - mu) / jnp.sqrt(var + 1e-5) * params["gamma"] + params["beta"]
    h = jnp.maximum(h, 0.0)
    y = h @ params["w2"] + params["b2"]
    return jax.nn.sigmoid(y) * a


if __name__ == "__main__":
    # Lane-dense small shapes: inp_dim == out_dim (required by xa * a).
    B = 512        # batch (tiled into 128-row blocks -> grid=(4,))
    D = 128        # inp_dim == out_dim (multiple of 128 -> unmasked stores)
    H = 256        # hid_dim (multiple of 128)

    key = jax.random.PRNGKey(0)
    ka, ko, k1, k2, k3, k4 = jax.random.split(key, 6)

    a = jax.random.normal(ka, (B, D), dtype=jnp.float32)
    o = jax.random.normal(ko, (B, D), dtype=jnp.float32)

    # Deterministic parameter init (weights stored as (in, out)).
    params = {
        "w1": jax.random.normal(k1, (2 * D, H), dtype=jnp.float32) * 0.05,
        "b1": jax.random.normal(k2, (1, H), dtype=jnp.float32) * 0.01,
        "gamma": jnp.ones((1, H), dtype=jnp.float32),
        "beta": jnp.zeros((1, H), dtype=jnp.float32),
        "w2": jax.random.normal(k3, (H, D), dtype=jnp.float32) * 0.05,
        "b2": jax.random.normal(k4, (1, D), dtype=jnp.float32) * 0.01,
    }

    out = jax.block_until_ready(conditional_forward(a, o, params))
    ref = reference_forward(a, o, params)

    assert out.shape == (B, D)
    max_err = float(jnp.max(jnp.abs(out - ref)))
    # bf16 MXU operands (f32 accumulation) -> tolerance relaxed vs. pure f32.
    assert max_err < 5e-2, f"mismatch vs reference: max abs err {max_err}"

    print("KERNEL_OK")
</pallas_src>

<mosaic_0001>
module attributes {stable_mosaic.version = 11 : i64} {
  func.func @_conditional_kernel(%arg0: i32, %arg1: memref<128x128xbf16, #tpu.memory_space<vmem>>, %arg2: memref<128x128xbf16, #tpu.memory_space<vmem>>, %arg3: memref<128x256xbf16, #tpu.memory_space<vmem>>, %arg4: memref<128x256xbf16, #tpu.memory_space<vmem>>, %arg5: memref<1x256xf32, #tpu.memory_space<vmem>>, %arg6: memref<1x256xf32, #tpu.memory_space<vmem>>, %arg7: memref<1x256xf32, #tpu.memory_space<vmem>>, %arg8: memref<256x128xbf16, #tpu.memory_space<vmem>>, %arg9: memref<1x128xf32, #tpu.memory_space<vmem>>, %arg10: memref<128x128xf32, #tpu.memory_space<vmem>>) attributes {dimension_semantics = [#tpu.dimension_semantics<parallel>], iteration_bounds = array<i64: 4>, scalar_prefetch = 0 : i64, scratch_operands = 0 : i64, tpu.core_type = #tpu.core_type<tc>, window_params = [{transform_indices = @transform_0, window_bounds = array<i64: 128, 128>}, {transform_indices = @transform_1, window_bounds = array<i64: 128, 128>}, {pipeline_mode = #tpu.pipeline_mode<synchronous>, transform_indices = @transform_2, window_bounds = array<i64: 128, 256>}, {pipeline_mode = #tpu.pipeline_mode<synchronous>, transform_indices = @transform_3, window_bounds = array<i64: 128, 256>}, {pipeline_mode = #tpu.pipeline_mode<synchronous>, transform_indices = @transform_4, window_bounds = array<i64: 1, 256>}, {pipeline_mode = #tpu.pipeline_mode<synchronous>, transform_indices = @transform_5, window_bounds = array<i64: 1, 256>}, {pipeline_mode = #tpu.pipeline_mode<synchronous>, transform_indices = @transform_6, window_bounds = array<i64: 1, 256>}, {pipeline_mode = #tpu.pipeline_mode<synchronous>, transform_indices = @transform_7, window_bounds = array<i64: 256, 128>}, {pipeline_mode = #tpu.pipeline_mode<synchronous>, transform_indices = @transform_8, window_bounds = array<i64: 1, 128>}, {transform_indices = @transform_9, window_bounds = array<i64: 128, 128>}]} {
    %c0 = arith.constant 0 : index
    %c0_0 = arith.constant 0 : index
    %0 = vector.load %arg1[%c0, %c0_0] : memref<128x128xbf16, #tpu.memory_space<vmem>>, vector<128x128xbf16>
    %c0_1 = arith.constant 0 : index
    %c0_2 = arith.constant 0 : index
    %1 = vector.load %arg2[%c0_1, %c0_2] : memref<128x128xbf16, #tpu.memory_space<vmem>>, vector<128x128xbf16>
    %c0_3 = arith.constant 0 : index
    %c0_4 = arith.constant 0 : index
    %2 = vector.load %arg3[%c0_3, %c0_4] : memref<128x256xbf16, #tpu.memory_space<vmem>>, vector<128x256xbf16>
    %cst = arith.constant dense<0.000000e+00> : vector<128x256xf32>
    %3 = tpu.matmul %0, %2, %cst {dimension_numbers = #tpu.dot_dimension_numbers<[1], [0], [0], [1], [0, 0, 1, 1], [], []>} : vector<128x128xbf16>, vector<128x256xbf16>, vector<128x256xf32> -> vector<128x256xf32>
    %c0_5 = arith.constant 0 : index
    %c0_6 = arith.constant 0 : index
    %4 = vector.load %arg4[%c0_5, %c0_6] : memref<128x256xbf16, #tpu.memory_space<vmem>>, vector<128x256xbf16>
    %cst_7 = arith.constant dense<0.000000e+00> : vector<128x256xf32>
    %5 = tpu.matmul %1, %4, %cst_7 {dimension_numbers = #tpu.dot_dimension_numbers<[1], [0], [0], [1], [0, 0, 1, 1], [], []>} : vector<128x128xbf16>, vector<128x256xbf16>, vector<128x256xf32> -> vector<128x256xf32>
    %6 = arith.addf %3, %5 : vector<128x256xf32>
    %c0_8 = arith.constant 0 : index
    %c0_9 = arith.constant 0 : index
    %7 = vector.load %arg5[%c0_8, %c0_9] : memref<1x256xf32, #tpu.memory_space<vmem>>, vector<1x256xf32>
    %8 = vector.broadcast %7 : vector<1x256xf32> to vector<128x256xf32>
    %9 = arith.addf %6, %8 : vector<128x256xf32>
    %cst_10 = arith.constant dense<0.000000e+00> : vector<128xf32>
    %10 = vector.multi_reduction <add>, %9, %cst_10 [1] : vector<128x256xf32> to vector<128xf32>
    %11 = vector.shape_cast %10 : vector<128xf32> to vector<128x1xf32>
    %cst_11 = arith.constant 2.560000e+02 : f32
    %12 = vector.broadcast %cst_11 : f32 to vector<128x1xf32>
    %13 = arith.divf %11, %12 : vector<128x1xf32>
    %14 = arith.mulf %9, %9 : vector<128x256xf32>
    %cst_12 = arith.constant dense<0.000000e+00> : vector<128xf32>
    %15 = vector.multi_reduction <add>, %14, %cst_12 [1] : vector<128x256xf32> to vector<128xf32>
    %16 = vector.shape_cast %15 : vector<128xf32> to vector<128x1xf32>
    %cst_13 = arith.constant 2.560000e+02 : f32
    %17 = vector.broadcast %cst_13 : f32 to vector<128x1xf32>
    %18 = arith.divf %16, %17 : vector<128x1xf32>
    %19 = arith.mulf %13, %13 : vector<128x1xf32>
    %20 = arith.subf %18, %19 : vector<128x1xf32>
    %c0_14 = arith.constant 0 : index
    %c0_15 = arith.constant 0 : index
    %21 = vector.load %arg6[%c0_14, %c0_15] : memref<1x256xf32, #tpu.memory_space<vmem>>, vector<1x256xf32>
    %cst_16 = arith.constant 9.99999974E-6 : f32
    %22 = vector.broadcast %cst_16 : f32 to vector<128x1xf32>
    %23 = arith.addf %20, %22 : vector<128x1xf32>
    %24 = math.rsqrt %23 : vector<128x1xf32>
    %25 = vector.broadcast %21 : vector<1x256xf32> to vector<128x256xf32>
    %26 = vector.broadcast %24 : vector<128x1xf32> to vector<128x256xf32>
    %27 = arith.mulf %25, %26 : vector<128x256xf32>
    %28 = vector.broadcast %13 : vector<128x1xf32> to vector<128x256xf32>
    %29 = arith.subf %9, %28 : vector<128x256xf32>
    %30 = arith.mulf %29, %27 : vector<128x256xf32>
    %c0_17 = arith.constant 0 : index
    %c0_18 = arith.constant 0 : index
    %31 = vector.load %arg7[%c0_17, %c0_18] : memref<1x256xf32, #tpu.memory_space<vmem>>, vector<1x256xf32>
    %32 = vector.broadcast %31 : vector<1x256xf32> to vector<128x256xf32>
    %33 = arith.addf %30, %32 : vector<128x256xf32>
    %cst_19 = arith.constant 0.000000e+00 : f32
    %34 = vector.broadcast %cst_19 : f32 to vector<128x256xf32>
    %35 = arith.maximumf %33, %34 : vector<128x256xf32>
    %36 = arith.truncf %35 : vector<128x256xf32> to vector<128x256xbf16>
    %c0_20 = arith.constant 0 : index
    %c0_21 = arith.constant 0 : index
    %37 = vector.load %arg8[%c0_20, %c0_21] : memref<256x128xbf16, #tpu.memory_space<vmem>>, vector<256x128xbf16>
    %cst_22 = arith.constant dense<0.000000e+00> : vector<128x128xf32>
    %38 = tpu.matmul %36, %37, %cst_22 {dimension_numbers = #tpu.dot_dimension_numbers<[1], [0], [0], [1], [0, 0, 1, 1], [], []>} : vector<128x256xbf16>, vector<256x128xbf16>, vector<128x128xf32> -> vector<128x128xf32>
    %c0_23 = arith.constant 0 : index
    %c0_24 = arith.constant 0 : index
    %39 = vector.load %arg9[%c0_23, %c0_24] : memref<1x128xf32, #tpu.memory_space<vmem>>, vector<1x128xf32>
    %40 = vector.broadcast %39 : vector<1x128xf32> to vector<128x128xf32>
    %41 = arith.addf %38, %40 : vector<128x128xf32>
    %42 = arith.negf %41 : vector<128x128xf32>
    %43 = math.exp %42 : vector<128x128xf32>
    %cst_25 = arith.constant 1.000000e+00 : f32
    %44 = vector.broadcast %cst_25 : f32 to vector<128x128xf32>
    %45 = arith.addf %44, %43 : vector<128x128xf32>
    %46 = arith.divf %44, %45 : vector<128x128xf32>
    %47 = arith.extf %0 : vector<128x128xbf16> to vector<128x128xf32>
    %48 = arith.mulf %46, %47 : vector<128x128xf32>
    %c0_26 = arith.constant 0 : index
    %c0_27 = arith.constant 0 : index
    %49 = vector.load %arg10[%c0_26, %c0_27] : memref<128x128xf32, #tpu.memory_space<vmem>>, vector<128x128xf32>
    tpu.vector_store %arg10[%c0_26, %c0_27], %48 {strides = array<i32>} : memref<128x128xf32, #tpu.memory_space<vmem>>, vector<128x128xf32>,
    return
  }
  func.func @transform_0(%arg0: i32) -> (i32, i32) {
    %c0_i32 = arith.constant 0 : i32
    %c0_i32_0 = arith.constant 0 : i32
    return %arg0, %c0_i32 : i32, i32
  }
  func.func @transform_1(%arg0: i32) -> (i32, i32) {
    %c0_i32 = arith.constant 0 : i32
    %c0_i32_0 = arith.constant 0 : i32
    return %arg0, %c0_i32 : i32, i32
  }
  func.func @transform_2(%arg0: i32) -> (i32, i32) {
    %c0_i32 = arith.constant 0 : i32
    %c0_i32_0 = arith.constant 0 : i32
    %c0_i32_1 = arith.constant 0 : i32
    return %c0_i32, %c0_i32_0 : i32, i32
  }
  func.func @transform_3(%arg0: i32) -> (i32, i32) {
    %c0_i32 = arith.constant 0 : i32
    %c0_i32_0 = arith.constant 0 : i32
    %c0_i32_1 = arith.constant 0 : i32
    return %c0_i32, %c0_i32_0 : i32, i32
  }
  func.func @transform_4(%arg0: i32) -> (i32, i32) {
    %c0_i32 = arith.constant 0 : i32
    %c0_i32_0 = arith.constant 0 : i32
    %c0_i32_1 = arith.constant 0 : i32
    return %c0_i32, %c0_i32_0 : i32, i32
  }
  func.func @transform_5(%arg0: i32) -> (i32, i32) {
    %c0_i32 = arith.constant 0 : i32
    %c0_i32_0 = arith.constant 0 : i32
    %c0_i32_1 = arith.constant 0 : i32
    return %c0_i32, %c0_i32_0 : i32, i32
  }
  func.func @transform_6(%arg0: i32) -> (i32, i32) {
    %c0_i32 = arith.constant 0 : i32
    %c0_i32_0 = arith.constant 0 : i32
    %c0_i32_1 = arith.constant 0 : i32
    return %c0_i32, %c0_i32_0 : i32, i32
  }
  func.func @transform_7(%arg0: i32) -> (i32, i32) {
    %c0_i32 = arith.constant 0 : i32
    %c0_i32_0 = arith.constant 0 : i32
    %c0_i32_1 = arith.constant 0 : i32
    return %c0_i32, %c0_i32_0 : i32, i32
  }
  func.func @transform_8(%arg0: i32) -> (i32, i32) {
    %c0_i32 = arith.constant 0 : i32
    %c0_i32_0 = arith.constant 0 : i32
    %c0_i32_1 = arith.constant 0 : i32
    return %c0_i32, %c0_i32_0 : i32, i32
  }
  func.func @transform_9(%arg0: i32) -> (i32, i32) {
    %c0_i32 = arith.constant 0 : i32
    %c0_i32_0 = arith.constant 0 : i32
    return %arg0, %c0_i32 : i32, i32
  }
}

</mosaic_0001>

<bundles_post_ra>
// kernel: tpu_custom_call.1
= control target key start
LH: loop header
LB: loop body
LE: loop exit
PB: predicated region body
PF: predicated region fallthrough
CT: control target
= control target key end

     0   :  { %s4034_s0 = inlined_call_operand.hbm [shape: bf16[512,128], index: 0, kind: input, shape index: {}]   ;;  %s4035_s1 = inlined_call_operand.hbm [shape: bf16[512,128], index: 1, kind: input, shape index: {}]   ;;  %s4036_s2 = inlined_call_operand.hbm [shape: bf16[128,256], index: 2, kind: input, shape index: {}]   ;;  %s4037_s3 = inlined_call_operand.hbm [shape: bf16[128,256], index: 3, kind: input, shape index: {}]   ;;  %s4038_s4 = inlined_call_operand.vmem [shape: f32[1,256], index: 4, kind: input, shape index: {}]   ;;  %s4039_s5 = inlined_call_operand.vmem [shape: f32[1,256], index: 5, kind: input, shape index: {}]   ;;  %s4040_s6 = inlined_call_operand.hbm [shape: f32[1,256], index: 6, kind: input, shape index: {}]   ;;  %s4041_s7 = inlined_call_operand.hbm [shape: bf16[256,128], index: 7, kind: input, shape index: {}]   ;;  %s4042_s8 = inlined_call_operand.vmem [shape: f32[1,128], index: 8, kind: input, shape index: {}]   ;;  %s4043_s9 = inlined_call_operand.hbm [shape: f32[512,128], index: 9, kind: output, shape index: {}]  }
   0x1   :  { %4051 = sst [smem:[#allocation23_spill]] %s4034_s0 }
   0x2   :  { %4052 = sst [smem:[#allocation24_spill]] %s4036_s2 }
   0x3   :  { %4053 = sst [smem:[#allocation25_spill]] %s4037_s3 }
   0x4   :  { %4054 = sst [smem:[#allocation26_spill]] %s4040_s6 }
   0x5   :  { %4055 = sst [smem:[#allocation27_spill]] %s4041_s7 }
   0x6   :  { %14 = vsyncpa [#allocation3], 0 }
   0x7   :  { %16 = vsyncpa [#allocation3 + $0x1], 0 }
   0x8   :  { %17 = vsyncpa [#allocation6], 0 }
   0x9   :  { %19 = vsyncpa [#allocation6 + $0x1], 0 }
   0xa   :  { %20 = vsyncpa [#allocation9], 0 }
   0xb   :  { %21 = vsyncpa [#allocation12], 0 }
   0xc   :  { %22 = vsyncpa [#allocation4], 0 }
   0xd   :  { %24 = vsyncpa [#allocation4 + $0x1], 0  ;;  %s3215_s30 = smov 0   ;;  %s3217_s10 = smov 0  }
   0xe   :  { %s3219_s11 = smov 0   ;;  %s3221_s12 = smov 0  }
   0xf LB: > { %4056 = sst [smem:[#allocation20_spill]] %s3148_s11  ;;  %s3236_s13 = sadd.s32 4294967295, %s3152_s12   ;;  %s3152_s12 = sphi %s3221_s12, %s4072_s12   ;;  %s3148_s11 = sphi %s3219_s11, %s4074_s11   ;;  %s3144_s10 = sphi %s3217_s10, %s4076_s10   ;;  %s3140_s30 = sphi %s3215_s30, %s4075_s30  }
  0x10   : > { %s2311_s14 = sadd.s32 4294967294, %s3152_s12   ;;  %p50_p0 = scmp.ne.s32.totalorder %s3144_s10, %s3140_s30 }
  0x11   : > { %p51_p1 = scmp.eq.s32.totalorder %s3236_s13, 0  ;;  %p247_p2 = scmp.eq.s32.totalorder %s3236_s13, 3 }
  0x12   : > { %p253_p3 = scmp.eq.s32.totalorder %s2311_s14, 3  ;;  %p2312_p5 = scmp.ge.s32.totalorder %s3152_s12, 1 }
  0x13   : > { %p3245_p4 = por %p51_p1, %p50_p0  ;;  %p260_p7 = scmp.lt.s32.totalorder %s3152_s12, 5 }
  0x14   : > { %p3250_p6 = por %p253_p3, %p50_p0  ;;  %s4059_s2 = sld [smem:[#allocation24_spill]] }
  0x15   : > { %p3258_p8 = pnand %p2312_p5, %p260_p7  ;;  %s3154_s21 = smov [#allocation7]  }
  0x16   : > { %s273_s22 = sshll.u32 %s3154_s21, 4  ;;  %s4062_s3 = sld [smem:[#allocation25_spill]]  ;;  %s274_s22 = int_to_ptr.vmem [resolvable:$true] %s273_s22 }
  0x17   : > { %p2714_p9 = pneg %p3258_p8  ;;  %s3155_s27 = smov 128  }
  0x18   : > { %s3156_s28 = smov 8   ;;  %s3157_s29 = smov [#allocation8]  }
  0x19   : > { %p3266_p10 = pnand %p2714_p9, %p51_p1  ;;  %s287_s14 = sshll.u32 %s3157_s29, 4  ;;  %s288_s14 = int_to_ptr.vmem [resolvable:$true] %s287_s14 }
  0x1a   : > { %s271_s19 = sshll.u32 %s4059_s2, 4  ;;  %s4063_s6 = sld [smem:[#allocation26_spill]]  ;;  %s272_s19 = int_to_ptr.hbm [resolvable:$true] %s271_s19 }
  0x1b   : > { %2717 = dma.hbm_to_vmem [thread:$0]  (!%p3266_p10), %s272_s19, 2048, %s274_s22, [#allocation6], %s3155_s27, %s3155_s27, %s3156_s28  }
  0x1c   : > { %s285_s26 = sshll.u32 %s4062_s3, 4  ;;  %s4064_s7 = sld [smem:[#allocation27_spill]]  ;;  %s286_s26 = int_to_ptr.hbm [resolvable:$true] %s285_s26 }
  0x1d   : > { %2720 = dma.hbm_to_vmem [thread:$0]  (!%p3266_p10), %s286_s26, 2048, %s288_s14, [#allocation9], %s3155_s27, %s3155_s27, %s3156_s28  }
  0x1e   : > { %s3158_s19 = smov [#allocation10]   ;;  %s3159_s29 = smov [#allocation11]  }
  0x1f   : > { %s308_s22 = sshll.u32 %s3158_s19, 4  ;;  %s319_s26 = sshll.u32 %s3159_s29, 4  ;;  %s309_s22 = int_to_ptr.vmem [resolvable:$true] %s308_s22  ;;  %s320_s26 = int_to_ptr.vmem [resolvable:$true] %s319_s26 }
  0x20   : > { %s306_s21 = sshll.u32 %s4063_s6, 4  ;;  %s4044_s27 = smov 64   ;;  %s307_s21 = int_to_ptr.hbm [resolvable:$true] %s306_s21 }
  0x21   : > { %2723 = dma.hbm_to_vmem [thread:$0]  (!%p3266_p10), %s307_s21, 32, %s309_s22, [#allocation9]  }
  0x22   : > { %s317_s2 = sshll.u32 %s4064_s7, 4  ;;  %s4046_s28 = smov 4   ;;  %s318_s2 = int_to_ptr.hbm [resolvable:$true] %s317_s2 }
  0x23   : > { %2726 = dma.hbm_to_vmem [thread:$0]  (!%p3266_p10), %s318_s2, 2048, %s320_s26, [#allocation12], %s4044_s27, %s4044_s27, %s4046_s28  }
  0x24   : > { %s3291_s14 = sadd.s32 1, %s3152_s12   ;;  %s37_s18 = sadd.s32 1, %s3148_s11 }
  0x25   : > { %4065 = sst [smem:[#allocation21_spill]] %s3291_s14  ;;  %s34_s17 = ssub.s32 %s3152_s12, %s3291_s14 }
  0x26   : > { %p35_p11 = scmp.eq.s32.totalorder %s34_s17, 0  ;;  %p44_p12 = scmp.ne.s32.totalorder %s3148_s11, %s3144_s10 }
  0x27   : > { %p45_p13 = scmp.eq.s32.totalorder %s3152_s12, 0  ;;  %p2742_p5 = scmp.lt.s32.totalorder %s3152_s12, 4 }
  0x28   : > { %s3300_s21 = scalar_select %p35_p11, %s3148_s11, %s37_s18  }
  0x29   : > { %p46_p0 = por %p45_p13, %p44_p12  ;;  %p3304_p3 = por %p247_p2, %p44_p12 }
  0x2a   : > { %4066 = sst [smem:[#allocation22_spill]] %s3300_s21  ;;  %s336_s23 = sand.u32 1, %s3148_s11  }
  0x2b   : > { %s3310_s25 = sshll.u32 %s336_s23, 6  ;;  %s2609_s2 = sshll.u32 %s3152_s12, 6 }
  0x2c   : > { %s4068_s0 = sld [smem:[#allocation23_spill]]  ;;  %s340_s26 = scalar_lea.vmem [#allocation2], %s3310_s25 }
  0x2d   : > { %s348_s17 = sshll.u32 %s340_s26, 4  ;;  %p3317_p7 = pnand %p2742_p5, %p46_p0  ;;  %s349_s17 = int_to_ptr.vmem [resolvable:$true] %s348_s17 }
  0x2e   : > { %s367_s6 = scalar_lea.hbm %s4035_s1, %s2609_s2  ;;  %s337_s21 = scalar_lea.sflag [#allocation3], %s336_s23 }
  0x2f   : > { %s368_s7 = sshll.u32 %s367_s6, 4  ;;  %p3014_p9 = pneg %p3317_p7  ;;  %s369_s7 = int_to_ptr.hbm [resolvable:$true] %s368_s7 }
  0x32   : > { %s345_s29 = scalar_lea.hbm %s4068_s0, %s2609_s2  ;;  %s3017_s26 = scalar_lea.hbm %s4068_s0, 256 }
  0x33   : > { %s346_s18 = sshll.u32 %s345_s29, 4  ;;  %s347_s18 = int_to_ptr.hbm [resolvable:$true] %s346_s18 }
  0x34   : > { %s3010_s11 = sshra.s32 %s347_s18, 4  ;;  %s3011_s11 = int_to_ptr.hbm [resolvable:$true] %s3010_s11 }
  0x35   : > { %s3012_s19 = scalar_lea.hbm %s3011_s11, 64  ;;  %p3018_p12 = scmp.lt.s32.totalorder %s3011_s11, %s4068_s0 }
  0x36   : > { %p3013_p2 = scmp.ne.s32.totalorder %s3011_s11, %s3012_s19  ;;  %p3019_p13 = scmp.lt.s32.totalorder %s3017_s26, %s3012_s19 }
  0x38   : > { %p3015_p10 = pnand %p3014_p9, %p3013_p2  ;;  %p3020_p0 = por %p3019_p13, %p3018_p12 }
  0x3a   : > { %p3016_p11 = pneg %p3015_p10 }
  0x3c   : > { %p3021_p5 = pnand %p3020_p0, %p3016_p11 }
  0x3e   : > { %3024 = shalt.err (!%p3021_p5)
}
  0x3f   : > { %s4070_s6 = smov 4   ;;  %s4071_s23 = smov 64  }
  0x40   : > { %2730 = dma.hbm_to_vmem [thread:$0]  (!%p3317_p7), %s347_s18, 1024, %s349_s17, %s337_s21, %s4071_s23, %s4071_s23, %s4070_s6  }
  0x41   : > { %s362_s2 = scalar_lea.vmem [#allocation5], %s3310_s25  ;;  %s358_s29 = sand.u32 1, %s3152_s12  }
  0x42   : > { %s370_s22 = sshll.u32 %s362_s2, 4  ;;  %s359_s3 = scalar_lea.sflag [#allocation6], %s358_s29  ;;  %s371_s22 = int_to_ptr.vmem [resolvable:$true] %s370_s22 }
  0x43   : > { %s3040_s11 = sshra.s32 %s369_s7, 4  ;;  %s3047_s0 = scalar_lea.hbm %s4035_s1, 256  ;;  %s3041_s11 = int_to_ptr.hbm [resolvable:$true] %s3040_s11 }
  0x44   : > { %s3042_s19 = scalar_lea.hbm %s3041_s11, 64  ;;  %p3048_p12 = scmp.lt.s32.totalorder %s3041_s11, %s4035_s1 }
  0x45   : > { %p3043_p2 = scmp.ne.s32.totalorder %s3041_s11, %s3042_s19  ;;  %p3049_p13 = scmp.lt.s32.totalorder %s3047_s0, %s3042_s19 }
  0x47   : > { %p3045_p10 = pnand %p3043_p2, %p3014_p9  ;;  %p3050_p0 = por %p3049_p13, %p3048_p12 }
  0x49   : > { %p3046_p11 = pneg %p3045_p10 }
  0x4b   : > { %p3051_p5 = pnand %p3050_p0, %p3046_p11 }
  0x4d   : > { %3054 = shalt.err (!%p3051_p5)
}
  0x4e   : > { %2733 = dma.hbm_to_vmem [thread:$0]  (!%p3317_p7), %s369_s7, 1024, %s371_s22, %s359_s3, %s4071_s23, %s4071_s23, %s4070_s6  }
  0x4f   : > { %382 = sbr.rel (%p3258_p8) target bundleno = 777 (0x309), region = 56  ;;  %s3359_s25 = sand.u32 (!%p3258_p8), 1, %s3144_s10  }
  0x50   : > { %s2325_s14 = sshll.u32 (!%p3258_p8), %s3359_s25, 6  ;;  %s385_s0 = scalar_lea.sflag (!%p3258_p8), [#allocation3], %s3359_s25 }
  0x51   : > { %s3363_s17 = scalar_lea.vmem (!%p3258_p8), [#allocation2], %s2325_s14 }
  0x54   : > { %3115 = dma.done.wait (%p3245_p4), %s385_s0, 1024  }
  0x55   : > { %3117 = vsyncadd (%p3245_p4), %s385_s0, 4294966272  ;;  %s394_s7 = sand.u32 1, %s3236_s13   ;;  %s3370_s27 = scalar_lea.vmem [#allocation5], %s2325_s14 }
  0x56   : > { %s395_s20 = scalar_lea.sflag [#allocation6], %s394_s7 }
  0x57   : > { %3119 = dma.done.wait (%p3245_p4), %s395_s20, 1024  }
  0x58   : > { %3121 = vsyncadd (%p3245_p4), %s395_s20, 4294966272 }
  0x59   : > { %3123 = dma.done.wait (%p51_p1), [#allocation6], 2048  }
  0x5a   : > { %3125 = vsyncadd (%p51_p1), [#allocation6], 4294965248 }
  0x5b   : > { %3127 = dma.done.wait (%p51_p1), [#allocation9], 2080  }
  0x5c   : > { %3129 = vsyncadd (%p51_p1), [#allocation9], 4294965216 }
  0x5d   : > { %3131 = dma.done.wait (%p51_p1), [#allocation12], 2048  }
  0x5e   : > { %3133 = vsyncadd (%p51_p1), [#allocation12], 4294965248  ;;  %v2422_v0 = vld [vmem:[#allocation8 + $0x70] sm:$0xf]  ;;  %v2658_v1 = vld [vmem:[#allocation8 + $0x74] sm:$0xf0] }
  0x5f   : > { %v2657_v2 = vld [vmem:[#allocation8 + $0x74] sm:$0xf]  ;;  %v2423_v3 = vor.u32 %v2658_v1, %v2422_v0  ;;  %v2424_v4 = vld [vmem:[#allocation8 + $0x78] sm:$0xf0]  ;;  %v2414_v5 = vld [vmem:[#allocation8 + $0x60] sm:$0xf] }
  0x60   : > { %v2656_v6 = vld [vmem:[#allocation8 + $0x64] sm:$0xf0]  ;;  %v2427_v7 = vor.u32 %v2657_v2, %v2424_v4  ;;  %v2655_v8 = vld [vmem:[#allocation8 + $0x64] sm:$0xf]  ;;  %v2416_v9 = vld [vmem:[#allocation8 + $0x68] sm:$0xf0] }
  0x61   : > { %2676 = vmatpush.bf16.msra.mxu2 %v2423_v3  ;;  %v2415_v10 = vor.u32 %v2656_v6, %v2414_v5  ;;  %654 = vmatpush.bf16.msra.mxu0 %v2423_v3  ;;  %v2419_v11 = vor.u32 %v2655_v8, %v2416_v9  ;;  %v2406_v12 = vld [vmem:[#allocation8 + $0x50] sm:$0xf]  ;;  %v2654_v13 = vld [vmem:[#allocation8 + $0x54] sm:$0xf0]  ;;  %v2653_v14 = vld [vmem:[#allocation8 + $0x54] sm:$0xf] }
  0x62   : > { %2684 = vmatpush.bf16.msra.mxu3 %v2427_v7  ;;  %703 = vmatpush.bf16.msra.mxu1 %v2427_v7  ;;  %v2408_v15 = vld [vmem:[#allocation8 + $0x58] sm:$0xf0]  ;;  %v2407_v16 = vor.u32 %v2654_v13, %v2406_v12  ;;  %v2398_v18 = vld [vmem:[#allocation8 + $0x40] sm:$0xf]  ;;  %v2652_v19 = vld [vmem:[#allocation8 + $0x44] sm:$0xf0] }
  0x63   : > { %v2411_v17 = vor.u32 %v2653_v14, %v2408_v15  ;;  %v2651_v20 = vld [vmem:[#allocation8 + $0x44] sm:$0xf]  ;;  %v2400_v21 = vld [vmem:[#allocation8 + $0x48] sm:$0xf0]  ;;  %v2399_v22 = vor.u32 %v2652_v19, %v2398_v18  ;;  %v2390_v24 = vld [vmem:[#allocation8 + $0x30] sm:$0xf] }
  0x64   : > { %v2403_v23 = vor.u32 %v2651_v20, %v2400_v21  ;;  %v2650_v25 = vld [vmem:[#allocation8 + $0x34] sm:$0xf0]  ;;  %v2649_v26 = vld [vmem:[#allocation8 + $0x34] sm:$0xf]  ;;  %v2392_v27 = vld [vmem:[#allocation8 + $0x38] sm:$0xf0] }
  0x65   : > { %2677 = vmatpush.bf16.msra.mxu2 %v2415_v10  ;;  %655 = vmatpush.bf16.msra.mxu0 %v2415_v10  ;;  %v2391_v28 = vor.u32 %v2650_v25, %v2390_v24  ;;  %v2395_v29 = vor.u32 %v2649_v26, %v2392_v27  ;;  %v2382_v30 = vld [vmem:[#allocation8 + $0x20] sm:$0xf]  ;;  %v2648_v31 = vld [vmem:[#allocation8 + $0x24] sm:$0xf0]  ;;  %v2647_v32 = vld [vmem:[#allocation8 + $0x24] sm:$0xf] }
  0x66   : > { %2685 = vmatpush.bf16.msra.mxu3 %v2419_v11  ;;  %704 = vmatpush.bf16.msra.mxu1 %v2419_v11  ;;  %v2384_v33 = vld [vmem:[#allocation8 + $0x28] sm:$0xf0]  ;;  %v2383_v34 = vor.u32 %v2648_v31, %v2382_v30  ;;  %v2374_v36 = vld [vmem:[#allocation8 + $0x10] sm:$0xf]  ;;  %v2646_v37 = vld [vmem:[#allocation8 + $0x14] sm:$0xf0] }
  0x67   : > { %v2387_v35 = vor.u32 %v2647_v32, %v2384_v33  ;;  %v2645_v38 = vld [vmem:[#allocation8 + $0x14] sm:$0xf]  ;;  %v2376_v39 = vld [vmem:[#allocation8 + $0x18] sm:$0xf0]  ;;  %v2375_v40 = vor.u32 %v2646_v37, %v2374_v36  ;;  %v2366_v42 = vld [vmem:[#allocation8] sm:$0xf] }
  0x68   : > { %v2379_v41 = vor.u32 %v2645_v38, %v2376_v39  ;;  %v2644_v43 = vld [vmem:[#allocation8 + $0x4] sm:$0xf0]  ;;  %v2643_v44 = vld [vmem:[#allocation8 + $0x4] sm:$0xf]  ;;  %v2368_v45 = vld [vmem:[#allocation8 + $0x8] sm:$0xf0] }
  0x69   : > { %2678 = vmatpush.bf16.msra.mxu2 %v2407_v16  ;;  %656 = vmatpush.bf16.msra.mxu0 %v2407_v16  ;;  %v2518_v46 = vld [vmem:[#allocation7 + $0x70] sm:$0xf]  ;;  %v2642_v47 = vld [vmem:[#allocation7 + $0x74] sm:$0xf0]  ;;  %v2641_v48 = vld [vmem:[#allocation7 + $0x74] sm:$0xf]  ;;  %v2367_v50 = vor.u32 %v2644_v43, %v2366_v42  ;;  %v2371_v51 = vor.u32 %v2643_v44, %v2368_v45 }
  0x6a   : > { %2686 = vmatpush.bf16.msra.mxu3 %v2411_v17  ;;  %705 = vmatpush.bf16.msra.mxu1 %v2411_v17  ;;  %v2520_v49 = vld [vmem:[#allocation7 + $0x78] sm:$0xf0]  ;;  %v2519_v52 = vor.u32 %v2642_v47, %v2518_v46  ;;  %v2510_v54 = vld [vmem:[#allocation7 + $0x60] sm:$0xf]  ;;  %v2640_v55 = vld [vmem:[#allocation7 + $0x64] sm:$0xf0] }
  0x6b   : > { %v2523_v53 = vor.u32 %v2641_v48, %v2520_v49  ;;  %v2623_v56 = vld [vmem:[%s3370_s27 + $0x20] sm:$0xff]  ;;  %v2512_v58 = vld [vmem:[#allocation7 + $0x68] sm:$0xf0]  ;;  %v2511_v59 = vor.u32 %v2640_v55, %v2510_v54  ;;  %v2502_v61 = vld [vmem:[#allocation7 + $0x50] sm:$0xf]  ;;  %s2331_s29 = sshll.u32 %s3359_s25, 7 }
  0x6c   : > { %v2639_v57 = vld [vmem:[#allocation7 + $0x64] sm:$0xf]  ;;  %v2638_v62 = vld [vmem:[#allocation7 + $0x54] sm:$0xf0]  ;;  %v2637_v63 = vld [vmem:[#allocation7 + $0x54] sm:$0xf] }
  0x6d   : > { %2679 = vmatpush.bf16.msra.mxu2 %v2399_v22  ;;  %657 = vmatpush.bf16.msra.mxu0 %v2399_v22  ;;  %v2515_v60 = vor.u32 %v2639_v57, %v2512_v58  ;;  %v2504_v0 = vld [vmem:[#allocation7 + $0x58] sm:$0xf0]  ;;  %v2503_v1 = vor.u32 %v2638_v62, %v2502_v61  ;;  %v2494_v3 = vld [vmem:[#allocation7 + $0x40] sm:$0xf]  ;;  %v2636_v4 = vld [vmem:[#allocation7 + $0x44] sm:$0xf0] }
  0x6e   : > { %2687 = vmatpush.bf16.msra.mxu3 %v2403_v23  ;;  %706 = vmatpush.bf16.msra.mxu1 %v2403_v23  ;;  %v2507_v2 = vor.u32 %v2637_v63, %v2504_v0  ;;  %v2635_v5 = vld [vmem:[#allocation7 + $0x44] sm:$0xf]  ;;  %v2496_v6 = vld [vmem:[#allocation7 + $0x48] sm:$0xf0]  ;;  %v2495_v7 = vor.u32 %v2636_v4, %v2494_v3  ;;  %v2486_v9 = vld [vmem:[#allocation7 + $0x30] sm:$0xf] }
  0x6f   : > { %v2499_v8 = vor.u32 %v2635_v5, %v2496_v6  ;;  %v2634_v10 = vld [vmem:[#allocation7 + $0x34] sm:$0xf0]  ;;  %v2633_v11 = vld [vmem:[#allocation7 + $0x34] sm:$0xf]  ;;  %v2488_v12 = vld [vmem:[#allocation7 + $0x38] sm:$0xf0] }
  0x70   : > { %v2487_v13 = vor.u32 %v2634_v10, %v2486_v9  ;;  %v2491_v14 = vor.u32 %v2633_v11, %v2488_v12  ;;  %v2478_v15 = vld [vmem:[#allocation7 + $0x20] sm:$0xf]  ;;  %v2632_v16 = vld [vmem:[#allocation7 + $0x24] sm:$0xf0]  ;;  %v2631_v18 = vld [vmem:[#allocation7 + $0x24] sm:$0xf] }
  0x71   : > { %2680 = vmatpush.bf16.msra.mxu2 %v2391_v28  ;;  %658 = vmatpush.bf16.msra.mxu0 %v2391_v28  ;;  %v2624_v17 = vld [vmem:[%s3370_s27 + $0x28] sm:$0xff]  ;;  %v2479_v20 = vor.u32 %v2632_v16, %v2478_v15  ;;  %v2470_v22 = vld [vmem:[#allocation7 + $0x10] sm:$0xf]  ;;  %v2630_v23 = vld [vmem:[#allocation7 + $0x14] sm:$0xf0]  ;;  %s3965_s3 = scalar_lea.vmem [#allocation13], %s2331_s29 }
  0x72   : > { %2688 = vmatpush.bf16.msra.mxu3 %v2395_v29  ;;  %707 = vmatpush.bf16.msra.mxu1 %v2395_v29  ;;  %v2480_v19 = vld [vmem:[#allocation7 + $0x28] sm:$0xf0]  ;;  %v2629_v24 = vld [vmem:[#allocation7 + $0x14] sm:$0xf]  ;;  %v2471_v25 = vor.u32 %v2630_v23, %v2470_v22  ;;  %v2472_v26 = vld [vmem:[#allocation7 + $0x18] sm:$0xf0] }
  0x73   : > { %v2483_v21 = vor.u32 %v2631_v18, %v2480_v19  ;;  %v2475_v27 = vor.u32 %v2629_v24, %v2472_v26  ;;  %v2462_v28 = vld [vmem:[#allocation7] sm:$0xf]  ;;  %v2628_v29 = vld [vmem:[#allocation7 + $0x4] sm:$0xf0]  ;;  %v2627_v31 = vld [vmem:[#allocation7 + $0x4] sm:$0xf] }
  0x74   : > { %v2619_v30 = vld [vmem:[%s3370_s27] sm:$0xff]  ;;  %v2464_v32 = vld [vmem:[#allocation7 + $0x8] sm:$0xf0]  ;;  %v2463_v33 = vor.u32 %v2628_v29, %v2462_v28  ;;  %v2626_v37 = vld [vmem:[%s3370_s27 + $0x38] sm:$0xff]  ;;  %s2675_s11 = sshll.u32 %s3236_s13, 7  ;;  %s2174_s21 = sshll.u32 %s3965_s3, 4  ;;  %s2175_s21 = int_to_ptr.vmem [resolvable:$true] %s2174_s21 }
  0x75   : > { %2681 = vmatpush.bf16.msra.mxu2 %v2383_v34  ;;  %659 = vmatpush.bf16.msra.mxu0 %v2383_v34  ;;  %v2467_v34 = vor.u32 %v2627_v31, %v2464_v32  ;;  %v2620_v36 = vld [vmem:[%s3370_s27 + $0x8] sm:$0xff]  ;;  %v2621_v38 = vld [vmem:[%s3370_s27 + $0x10] sm:$0xff]  ;;  %v2611_v39 = vld [vmem:[%s3363_s17] sm:$0xff]  ;;  %s2173_s28 = scalar_lea.hbm %s4043_s9, %s2675_s11  ;;  %s2162_s13 = scalar_lea.sflag [#allocation4], %s3359_s25 }
  0x76   : > { %2689 = vmatpush.bf16.msra.mxu3 %v2387_v35  ;;  %708 = vmatpush.bf16.msra.mxu1 %v2387_v35  ;;  %v2625_v35 = vld [vmem:[%s3370_s27 + $0x30] sm:$0xff]  ;;  %v2614_v43 = vld [vmem:[%s3363_s17 + $0x18] sm:$0xff]  ;;  %v2615_v44 = vld [vmem:[%s3363_s17 + $0x20] sm:$0xff]  ;;  %s2176_s14 = sshll.u32 %s2173_s28, 4  ;;  %s2177_s14 = int_to_ptr.hbm [resolvable:$true] %s2176_s14 }
  0x77   : > { %v2613_v42 = vld [vmem:[%s3363_s17 + $0x10] sm:$0xff]  ;;  %v2616_v49 = vld [vmem:[%s3363_s17 + $0x28] sm:$0xff]  ;;  %v978_v3 = vld [vmem:[%s4038_s4] sm:$0x3]  ;;  %s3084_s0 = sshra.s32 %s2177_s14, 4  ;;  %s3085_s0 = int_to_ptr.hbm [resolvable:$true] %s3084_s0 }
  0x78   : > { %v2617_v54 = vld [vmem:[%s3363_s17 + $0x30] sm:$0xff]  ;;  %v3439_v5 = vperm.slane %v978_v3, 0  ;;  %p3091_p7 = scmp.lt.s32.totalorder %s3085_s0, %s4043_s9 }
  0x79   : > { %2682 = vmatpush.bf16.msra.mxu2 %v2375_v40  ;;  %660 = vmatpush.bf16.msra.mxu0 %v2375_v40  ;;  %v2622_v40 = vld [vmem:[%s3370_s27 + $0x18] sm:$0xff]  ;;  %s3090_s27 = scalar_lea.hbm %s4043_s9, 512 }
  0x7a   : > { %2690 = vmatpush.bf16.msra.mxu3 %v2379_v41  ;;  %709 = vmatpush.bf16.msra.mxu1 %v2379_v41  ;;  %v2612_v41 = vld [vmem:[%s3363_s17 + $0x8] sm:$0xff] }
  0x7d   : > { %2683 = vmatpush.bf16.msra.mxu2 %v2367_v50  ;;  %661 = vmatpush.bf16.msra.mxu0 %v2367_v50 }
  0x7e   : > { %2691 = vmatpush.bf16.msra.mxu3 %v2371_v51  ;;  %710 = vmatpush.bf16.msra.mxu1 %v2371_v51 }
  0x80   : > { %682 = vmatmul.bf16.vlgmr.msra.gmra.mxu2 %v2623_v56  ;;  %662 = vmatmul.bf16.vlgmr.msra.gmra.mxu0 %v2619_v30 }
  0x81   : > { %880 = vmatpush.bf16.msrb.mxu2 %v2519_v52  ;;  %731 = vmatmul.bf16.vlgmr.msra.gmra.mxu3 %v2623_v56 }
  0x82   : > { %929 = vmatpush.bf16.msrb.mxu3 %v2523_v53  ;;  %711 = vmatmul.bf16.vlgmr.msra.gmra.mxu1 %v2619_v30 }
  0x85   : > { %881 = vmatpush.bf16.msrb.mxu2 %v2511_v59  ;;  %v2618_v59 = vld [vmem:[%s3363_s17 + $0x38] sm:$0xff] }
  0x86   : > { %930 = vmatpush.bf16.msrb.mxu3 %v2515_v60 }
  0x89   : > { %882 = vmatpush.bf16.msrb.mxu2 %v2503_v1 }
  0x8a   : > { %931 = vmatpush.bf16.msrb.mxu3 %v2507_v2 }
  0x8d   : > { %883 = vmatpush.bf16.msrb.mxu2 %v2495_v7  ;;  %v3441_v7 = vperm.slane %v978_v3, 1 }
  0x8e   : > { %932 = vmatpush.bf16.msrb.mxu3 %v2499_v8 }
  0x90   : > { %687 = vmatmul.bf16.gmra.mxu2 %v2624_v17  ;;  %667 = vmatmul.bf16.gmra.mxu0 %v2620_v36 }
  0x91   : > { %884 = vmatpush.bf16.msrb.mxu2 %v2487_v13  ;;  %736 = vmatmul.bf16.gmra.mxu3 %v2624_v17 }
  0x92   : > { %933 = vmatpush.bf16.msrb.mxu3 %v2491_v14  ;;  %716 = vmatmul.bf16.gmra.mxu1 %v2620_v36 }
  0x95   : > { %885 = vmatpush.bf16.msrb.mxu2 %v2479_v20 }
  0x96   : > { %934 = vmatpush.bf16.msrb.mxu3 %v2483_v21 }
  0x99   : > { %886 = vmatpush.bf16.msrb.mxu2 %v2471_v25 }
  0x9a   : > { %935 = vmatpush.bf16.msrb.mxu3 %v2475_v27 }
  0x9d   : > { %887 = vmatpush.bf16.msrb.mxu2 %v2463_v33 }
  0x9e   : > { %936 = vmatpush.bf16.msrb.mxu3 %v2467_v34 }
  0xa0   : > { %692 = vmatmul.bf16.gmra.mxu2 %v2625_v35  ;;  %672 = vmatmul.bf16.gmra.mxu0 %v2621_v38 }
  0xa1   : > { %741 = vmatmul.bf16.gmra.mxu3 %v2625_v35 }
  0xa2   : > { %721 = vmatmul.bf16.gmra.mxu1 %v2621_v38 }
  0xb0   : > { %697 = vmatmul.bf16.gmra.mxu2 %v2626_v37  ;;  %677 = vmatmul.bf16.gmra.mxu0 %v2622_v40 }
  0xb1   : > { %746 = vmatmul.bf16.gmra.mxu3 %v2626_v37 }
  0xb2   : > { %726 = vmatmul.bf16.gmra.mxu1 %v2622_v40 }
  0xc0   : > { %888 = vmatmul.bf16.vlgmr.msrb.gmra.mxu2 %v2611_v39 }
  0xc1   : > { %937 = vmatmul.bf16.vlgmr.msrb.gmra.mxu3 %v2611_v39 }
  0xd0   : > { %893 = vmatmul.bf16.gmra.mxu2 %v2612_v41 }
  0xd1   : > { %942 = vmatmul.bf16.gmra.mxu3 %v2612_v41 }
  0xe0   : > { %898 = vmatmul.bf16.gmra.mxu2 %v2613_v42 }
  0xe1   : > { %947 = vmatmul.bf16.gmra.mxu3 %v2613_v42 }
  0xf0   : > { %903 = vmatmul.bf16.gmra.mxu2 %v2614_v43 }
  0xf1   : > { %952 = vmatmul.bf16.gmra.mxu3 %v2614_v43 }
  0xfd   : > { %v663_v62 = vpop.f32.mrf.mxu0 }
  0xff   : > { %v712_v63 = vpop.f32.mrf.mxu1 }
 0x100   : > { %908 = vmatmul.bf16.gmra.mxu2 %v2615_v44 }
 0x101   : > { %957 = vmatmul.bf16.gmra.mxu3 %v2615_v44 }
 0x103   : > { %v3401_v45 = vpop.f32.mrf.mxu2 }
 0x104   : > { %v3403_v46 = vpop.f32.mrf.mxu3 }
 0x105   : > { %v665_v2 = vpop.f32.mrf.mxu0 }
 0x107   : > { %v714_v4 = vpop.f32.mrf.mxu1 }
 0x10b   : > { %v3405_v47 = vpop.f32.mrf.mxu2 }
 0x10c   : > { %v3407_v48 = vpop.f32.mrf.mxu3 }
 0x10d   : > { %v668_v15 = vpop.f32.mrf.mxu0 }
 0x10f   : > { %v717_v17 = vpop.f32.mrf.mxu1 }
 0x110   : > { %913 = vmatmul.bf16.gmra.mxu2 %v2616_v49 }
 0x111   : > { %962 = vmatmul.bf16.gmra.mxu3 %v2616_v49 }
 0x113   : > { %v3410_v50 = vpop.f32.mrf.mxu2 }
 0x114   : > { %v3412_v51 = vpop.f32.mrf.mxu3 }
 0x115   : > { %v670_v28 = vpop.f32.mrf.mxu0 }
 0x117   : > { %v719_v31 = vpop.f32.mrf.mxu1 }
 0x11b   : > { %v3414_v52 = vpop.f32.mrf.mxu2 }
 0x11c   : > { %v3416_v53 = vpop.f32.mrf.mxu3 }
 0x11d   : > { %v673_v44 = vpop.f32.mrf.mxu0 }
 0x120   : > { %918 = vmatmul.bf16.gmra.mxu2 %v2617_v54 }
 0x121   : > { %967 = vmatmul.bf16.gmra.mxu3 %v2617_v54  ;;  %v722_v54 = vpop.f32.mrf.mxu1 }
 0x123   : > { %v3419_v55 = vpop.f32.mrf.mxu2 }
 0x124   : > { %v3421_v56 = vpop.f32.mrf.mxu3 }
 0x12b   : > { %v3423_v57 = vpop.f32.mrf.mxu2 }
 0x12c   : > { %v3425_v58 = vpop.f32.mrf.mxu3 }
 0x130   : > { %923 = vmatmul.bf16.gmra.mxu2 %v2618_v59 }
 0x131   : > { %972 = vmatmul.bf16.gmra.mxu3 %v2618_v59 }
 0x133   : > { %v3428_v60 = vpop.f32.mrf.mxu2 }
 0x134   : > { %v3430_v61 = vpop.f32.mrf.mxu3 }
 0x13b   : > { %v3432_v0 = vpop.f32.mrf.mxu2 }
 0x13c   : > { %v3434_v1 = vpop.f32.mrf.mxu3 }
 0x143   : > { %v889_v6 = vpop.f32.mrf.mxu2 }
 0x144   : > { %v890_v8 = vadd.f32 %v889_v6, %v663_v62  ;;  %v938_v9 = vpop.f32.mrf.mxu3 }
 0x145   : > { %v939_v10 = vadd.f32 %v938_v9, %v712_v63 }
 0x146   : > { %v3444_v11 = vadd.f32 %v3439_v5, %v890_v8 }
 0x147   : > { %v3447_v12 = vadd.f32 %v3441_v7, %v939_v10 }
 0x148   : > { %v1087_v13 = vmul.f32 %v3444_v11, %v3444_v11 }
 0x149   : > { %v1016_v14 = vadd.f32 %v3447_v12, %v3444_v11  ;;  %v1088_v16 = vmul.f32 %v3447_v12, %v3447_v12 }
 0x14b   : > { %1017 = vadd.xlane.f32.xlu0 %v1016_v14  ;;  %v891_v18 = vpop.f32.mrf.mxu2  ;;  %v1119_v19 = vadd.f32 %v1088_v16, %v1087_v13  ;;  %v675_v14 = vpop.f32.mrf.mxu0 }
 0x14c   : > { %v892_v20 = vadd.f32 %v891_v18, %v665_v2  ;;  %v940_v21 = vpop.f32.mrf.mxu3  ;;  %v724_v16 = vpop.f32.mrf.mxu1 }
 0x14d   : > { %v941_v22 = vadd.f32 %v940_v21, %v714_v4  ;;  %1120 = vadd.xlane.f32.xlu1 %v1119_v19 }
 0x14e   : > { %v3456_v23 = vadd.f32 %v3439_v5, %v892_v20 }
 0x14f   : > { %v3459_v24 = vadd.f32 %v3441_v7, %v941_v22 }
 0x150   : > { %v1089_v25 = vmul.f32 %v3456_v23, %v3456_v23 }
 0x151   : > { %v1019_v26 = vadd.f32 %v3459_v24, %v3456_v23  ;;  %v1090_v27 = vmul.f32 %v3459_v24, %v3459_v24 }
 0x153   : > { %1020 = vadd.xlane.f32.xlu0 %v1019_v26  ;;  %v894_v29 = vpop.f32.mrf.mxu2  ;;  %v1122_v30 = vadd.f32 %v1090_v27, %v1089_v25 }
 0x154   : > { %v895_v32 = vadd.f32 %v894_v29, %v668_v15  ;;  %v943_v33 = vpop.f32.mrf.mxu3 }
 0x155   : > { %v944_v34 = vadd.f32 %v943_v33, %v717_v17  ;;  %1123 = vadd.xlane.f32.xlu1 %v1122_v30  ;;  %v678_v30 = vpop.f32.mrf.mxu0  ;;  %v727_v33 = vpop.f32.mrf.mxu1 }
 0x156   : > { %v3468_v35 = vadd.f32 %v3439_v5, %v895_v32 }
 0x157   : > { %v3471_v36 = vadd.f32 %v3441_v7, %v944_v34 }
 0x158   : > { %v1091_v37 = vmul.f32 %v3468_v35, %v3468_v35 }
 0x159   : > { %v1022_v38 = vadd.f32 %v3471_v36, %v3468_v35  ;;  %v1092_v39 = vmul.f32 %v3471_v36, %v3471_v36 }
 0x15b   : > { %1023 = vadd.xlane.f32.xlu2 %v1022_v38  ;;  %v896_v40 = vpop.f32.mrf.mxu2  ;;  %v1125_v41 = vadd.f32 %v1092_v39, %v1091_v37 }
 0x15c   : > { %v897_v42 = vadd.f32 %v896_v40, %v670_v28  ;;  %v945_v43 = vpop.f32.mrf.mxu3 }
 0x15d   : > { %v946_v49 = vadd.f32 %v945_v43, %v719_v31  ;;  %1126 = vadd.xlane.f32.xlu0 %v1125_v41 }
 0x15e   : > { %v3480_v59 = vadd.f32 %v3439_v5, %v897_v42 }
 0x15f   : > { %v3483_v62 = vadd.f32 %v3441_v7, %v946_v49 }
 0x160   : > { %v1093_v63 = vmul.f32 %v3480_v59, %v3480_v59 }
 0x161   : > { %v1025_v2 = vadd.f32 %v3483_v62, %v3480_v59  ;;  %v1094_v3 = vmul.f32 %v3483_v62, %v3483_v62 }
 0x163   : > { %1026 = vadd.xlane.f32.xlu2 %v1025_v2  ;;  %v899_v4 = vpop.f32.mrf.mxu2  ;;  %v1128_v6 = vadd.f32 %v1094_v3, %v1093_v63  ;;  %v729_v3 = vpop.f32.mrf.mxu1 }
 0x164   : > { %v900_v8 = vadd.f32 %v899_v4, %v673_v44  ;;  %v948_v9 = vpop.f32.mrf.mxu3 }
 0x165   : > { %v949_v10 = vadd.f32 %v948_v9, %v722_v54  ;;  %1129 = vadd.xlane.f32.xlu1 %v1128_v6  ;;  %v680_v54 = vpop.f32.mrf.mxu0 }
 0x166   : > { %v3492_v13 = vadd.f32 %v3439_v5, %v900_v8 }
 0x167   : > { %v3495_v15 = vadd.f32 %v3441_v7, %v949_v10 }
 0x168   : > { %v1095_v17 = vmul.f32 %v3492_v13, %v3492_v13 }
 0x169   : > { %v1028_v18 = vadd.f32 %v3495_v15, %v3492_v13  ;;  %v1096_v19 = vmul.f32 %v3495_v15, %v3495_v15 }
 0x16b   : > { %1029 = vadd.xlane.f32.xlu2 %v1028_v18  ;;  %v901_v20 = vpop.f32.mrf.mxu2  ;;  %v1131_v21 = vadd.f32 %v1096_v19, %v1095_v17 }
 0x16c   : > { %v902_v22 = vadd.f32 %v901_v20, %v675_v14  ;;  %v950_v25 = vpop.f32.mrf.mxu3 }
 0x16d   : > { %v951_v26 = vadd.f32 %v950_v25, %v724_v16  ;;  %1132 = vadd.xlane.f32.xlu1 %v1131_v21 }
 0x16e   : > { %v3504_v27 = vadd.f32 %v3439_v5, %v902_v22 }
 0x16f   : > { %v3507_v28 = vadd.f32 %v3441_v7, %v951_v26 }
 0x170   : > { %v1097_v29 = vmul.f32 %v3504_v27, %v3504_v27 }
 0x171   : > { %v1031_v31 = vadd.f32 %v3507_v28, %v3504_v27  ;;  %v1098_v32 = vmul.f32 %v3507_v28, %v3507_v28 }
 0x173   : > { %1032 = vadd.xlane.f32.xlu0 %v1031_v31  ;;  %v904_v34 = vpop.f32.mrf.mxu2  ;;  %v1134_v37 = vadd.f32 %v1098_v32, %v1097_v29  ;;  %v2666_v29 = vld [vmem:[#allocation11 + $0x38] sm:$0xff] }
 0x174   : > { %v905_v38 = vadd.f32 %v904_v34, %v678_v30  ;;  %v953_v39 = vpop.f32.mrf.mxu3  ;;  %1711 = vmatpush.bf16.msrb.mxu0 %v2666_v29 }
 0x175   : > { %v954_v40 = vadd.f32 %v953_v39, %v727_v33  ;;  %1135 = vadd.xlane.f32.xlu2 %v1134_v37 }
 0x176   : > { %v3516_v41 = vadd.f32 %v3439_v5, %v905_v38 }
 0x177   : > { %v3519_v42 = vadd.f32 %v3441_v7, %v954_v40  ;;  %v2674_v40 = vld [vmem:[#allocation11 + $0x78] sm:$0xff] }
 0x178   : > { %v1099_v43 = vmul.f32 %v3516_v41, %v3516_v41  ;;  %1760 = vmatpush.bf16.msrb.mxu1 %v2674_v40 }
 0x179   : > { %v1034_v44 = vadd.f32 %v3519_v42, %v3516_v41  ;;  %v1100_v49 = vmul.f32 %v3519_v42, %v3519_v42 }
 0x17b   : > { %1035 = vadd.xlane.f32.xlu0 %v1034_v44  ;;  %v906_v63 = vpop.f32.mrf.mxu2  ;;  %v1137_v2 = vadd.f32 %v1100_v49, %v1099_v43  ;;  %v2665_v43 = vld [vmem:[#allocation11 + $0x30] sm:$0xff] }
 0x17c   : > { %v907_v4 = vadd.f32 %v906_v63, %v680_v54  ;;  %v955_v6 = vpop.f32.mrf.mxu3  ;;  %1712 = vmatpush.bf16.msrb.mxu0 %v2665_v43 }
 0x17d   : > { %v956_v8 = vadd.f32 %v955_v6, %v729_v3  ;;  %1138 = vadd.xlane.f32.xlu2 %v1137_v2 }
 0x17e   : > { %v3528_v9 = vadd.f32 %v3439_v5, %v907_v4 }
 0x17f   : > { %v3531_v10 = vadd.f32 %v3441_v7, %v956_v8  ;;  %v2673_v8 = vld [vmem:[#allocation11 + $0x70] sm:$0xff] }
 0x180   : > { %v1101_v14 = vmul.f32 %v3528_v9, %v3528_v9  ;;  %1761 = vmatpush.bf16.msrb.mxu1 %v2673_v8 }
 0x181   : > { %v1037_v16 = vadd.f32 %v3531_v10, %v3528_v9  ;;  %v1102_v17 = vmul.f32 %v3531_v10, %v3531_v10 }
 0x183   : > { %1038 = vadd.xlane.f32.xlu1 %v1037_v16  ;;  %v909_v18 = vpop.f32.mrf.mxu2  ;;  %v1140_v19 = vadd.f32 %v1102_v17, %v1101_v14  ;;  %v2664_v14 = vld [vmem:[#allocation11 + $0x28] sm:$0xff] }
 0x184   : > { %v910_v20 = vadd.f32 %v909_v18, %v3401_v45  ;;  %v958_v21 = vpop.f32.mrf.mxu3  ;;  %1713 = vmatpush.bf16.msrb.mxu0 %v2664_v14 }
 0x185   : > { %v959_v22 = vadd.f32 %v958_v21, %v3403_v46  ;;  %1141 = vadd.xlane.f32.xlu0 %v1140_v19 }
 0x186   : > { %v3542_v25 = vadd.f32 %v3439_v5, %v910_v20 }
 0x187   : > { %v3545_v26 = vadd.f32 %v3441_v7, %v959_v22 }
 0x188   : > { %v1103_v30 = vmul.f32 %v3542_v25, %v3542_v25 }
 0x189   : > { %v1040_v31 = vadd.f32 %v3545_v26, %v3542_v25  ;;  %v1104_v45 = vmul.f32 %v3545_v26, %v3545_v26 }
 0x18b   : > { %1041 = vadd.xlane.f32.xlu1 %v1040_v31  ;;  %v911_v46 = vpop.f32.mrf.mxu2  ;;  %v1143_v32 = vadd.f32 %v1104_v45, %v1103_v30  ;;  %v2672_v30 = vld [vmem:[#allocation11 + $0x68] sm:$0xff] }
 0x18c   : > { %v912_v33 = vadd.f32 %v911_v46, %v3405_v47  ;;  %v960_v34 = vpop.f32.mrf.mxu3  ;;  %1762 = vmatpush.bf16.msrb.mxu1 %v2672_v30 }
 0x18d   : > { %v961_v37 = vadd.f32 %v960_v34, %v3407_v48  ;;  %1144 = vadd.xlane.f32.xlu0 %v1143_v32  ;;  %v3162_v32 = vmov 256.0  }
 0x18e   : > { %v3556_v38 = vadd.f32 %v3439_v5, %v912_v33  ;;  %2792 = vrcp.f32 %v3162_v32 }
 0x18f   : > { %v3559_v39 = vadd.f32 %v3441_v7, %v961_v37 }
 0x190   : > { %v1105_v44 = vmul.f32 %v3556_v38, %v3556_v38 }
 0x191   : > { %v1043_v49 = vadd.f32 %v3559_v39, %v3556_v38  ;;  %v1106_v47 = vmul.f32 %v3559_v39, %v3559_v39 }
 0x193   : > { %1044 = vadd.xlane.f32.xlu2 %v1043_v49  ;;  %v914_v48 = vpop.f32.mrf.mxu2  ;;  %v1146_v54 = vadd.f32 %v1106_v47, %v1105_v44 }
 0x194   : > { %v915_v63 = vadd.f32 %v914_v48, %v3410_v50  ;;  %v963_v2 = vpop.f32.mrf.mxu3  ;;  %v2793_v49 = vpop.eup %2792 }
 0x195   : > { %v964_v3 = vadd.f32 %v963_v2, %v3412_v51  ;;  %1147 = vadd.xlane.f32.xlu1 %v1146_v54  ;;  %v1065_v2 = vmul.f32 256.0, %v2793_v49  ;;  %vm1069_vm0 = vweird.f32 %v2793_v49 }
 0x196   : > { %v3570_v4 = vadd.f32 %v3439_v5, %v915_v63 }
 0x197   : > { %v3573_v6 = vadd.f32 %v3441_v7, %v964_v3 }
 0x198   : > { %v1107_v16 = vmul.f32 %v3570_v4, %v3570_v4 }
 0x199   : > { %v1046_v17 = vadd.f32 %v3573_v6, %v3570_v4  ;;  %v1108_v50 = vmul.f32 %v3573_v6, %v3573_v6 }
 0x19b   : > { %1047 = vadd.xlane.f32.xlu2 %v1046_v17  ;;  %v916_v51 = vpop.f32.mrf.mxu2  ;;  %v1149_v18 = vadd.f32 %v1108_v50, %v1107_v16  ;;  %v1066_v17 = vsub.f32 1.0, %v1065_v2 }
 0x19c   : > { %v917_v19 = vadd.f32 %v916_v51, %v3414_v52  ;;  %v965_v20 = vpop.f32.mrf.mxu3 }
 0x19d   : > { %v966_v21 = vadd.f32 %v965_v20, %v3416_v53  ;;  %1150 = vadd.xlane.f32.xlu1 %v1149_v18  ;;  %v1067_v20 = vmul.f32 %v2793_v49, %v1066_v17 }
 0x19e   : > { %v3584_v22 = vadd.f32 %v3439_v5, %v917_v19 }
 0x19f   : > { %v3587_v29 = vadd.f32 %v3441_v7, %v966_v21 }
 0x1a0   : > { %v1109_v31 = vmul.f32 %v3584_v22, %v3584_v22 }
 0x1a1   : > { %v1049_v45 = vadd.f32 %v3587_v29, %v3584_v22  ;;  %v1110_v52 = vmul.f32 %v3587_v29, %v3587_v29 }
 0x1a3   : > { %1050 = vadd.xlane.f32.xlu0 %v1049_v45  ;;  %v919_v53 = vpop.f32.mrf.mxu2  ;;  %v1152_v46 = vadd.f32 %v1110_v52, %v1109_v31  ;;  %v2663_v31 = vld [vmem:[#allocation11 + $0x20] sm:$0xff] }
 0x1a4   : > { %v920_v33 = vadd.f32 %v919_v53, %v3419_v55  ;;  %v968_v34 = vpop.f32.mrf.mxu3  ;;  %v2671_v52 = vld [vmem:[#allocation11 + $0x60] sm:$0xff]  ;;  %1714 = vmatpush.bf16.msrb.mxu0 %v2663_v31 }
 0x1a5   : > { %v969_v37 = vadd.f32 %v968_v34, %v3421_v56  ;;  %1153 = vadd.xlane.f32.xlu2 %v1152_v46  ;;  %v1068_v46 = vadd.f32 %v2793_v49, %v1067_v20  ;;  %1763 = vmatpush.bf16.msrb.mxu1 %v2671_v52  ;;  %v2662_v34 = vld [vmem:[#allocation11 + $0x18] sm:$0xff]  ;;  %v2667_v31 = vld [vmem:[#allocation11 + $0x40] sm:$0xff] }
 0x1a6   : > { %v3598_v40 = vadd.f32 %v3439_v5, %v920_v33 }
 0x1a7   : > { %v3601_v43 = vadd.f32 %v3441_v7, %v969_v37  ;;  %v2670_v37 = vld [vmem:[#allocation11 + $0x58] sm:$0xff] }
 0x1a8   : > { %v1111_v44 = vmul.f32 %v3598_v40, %v3598_v40  ;;  %1715 = vmatpush.bf16.msrb.mxu0 %v2662_v34 }
 0x1a9   : > { %v1052_v47 = vadd.f32 %v3601_v43, %v3598_v40  ;;  %v1112_v55 = vmul.f32 %v3601_v43, %v3601_v43  ;;  %1764 = vmatpush.bf16.msrb.mxu1 %v2670_v37 }
 0x1ab   : > { %1053 = vadd.xlane.f32.xlu0 %v1052_v47  ;;  %v921_v48 = vpop.f32.mrf.mxu2  ;;  %v1155_v56 = vadd.f32 %v1112_v55, %v1111_v44  ;;  %v3638_v55 = vsel %vm1069_vm0, %v2793_v49, %v1068_v46 }
 0x1ac   : > { %v922_v54 = vadd.f32 %v921_v48, %v3423_v57  ;;  %v970_v63 = vpop.f32.mrf.mxu3 }
 0x1ad   : > { %v971_v3 = vadd.f32 %v970_v63, %v3425_v58  ;;  %1156 = vadd.xlane.f32.xlu2 %v1155_v56 }
 0x1ae   : > { %v3612_v8 = vadd.f32 %v3439_v5, %v922_v54 }
 0x1af   : > { %v3615_v14 = vadd.f32 %v3441_v7, %v971_v3  ;;  %v2661_v3 = vld [vmem:[#allocation11 + $0x10] sm:$0xff] }
 0x1b0   : > { %v1113_v16 = vmul.f32 %v3612_v8, %v3612_v8  ;;  %1716 = vmatpush.bf16.msrb.mxu0 %v2661_v3 }
 0x1b1   : > { %v1055_v50 = vadd.f32 %v3615_v14, %v3612_v8  ;;  %v1114_v57 = vmul.f32 %v3615_v14, %v3615_v14 }
 0x1b3   : > { %1056 = vadd.xlane.f32.xlu1 %v1055_v50  ;;  %v924_v51 = vpop.f32.mrf.mxu2  ;;  %v1158_v58 = vadd.f32 %v1114_v57, %v1113_v16  ;;  %v2660_v57 = vld [vmem:[#allocation11 + $0x8] sm:$0xff] }
 0x1b4   : > { %v925_v18 = vadd.f32 %v924_v51, %v3428_v60  ;;  %v973_v19 = vpop.f32.mrf.mxu3  ;;  %v2668_v51 = vld [vmem:[#allocation11 + $0x48] sm:$0xff]  ;;  %1717 = vmatpush.bf16.msrb.mxu0 %v2660_v57 }
 0x1b5   : > { %v974_v21 = vadd.f32 %v973_v19, %v3430_v61  ;;  %1159 = vadd.xlane.f32.xlu0 %v1158_v58 }
 0x1b6   : > { %v3626_v30 = vadd.f32 %v3439_v5, %v925_v18 }
 0x1b7   : > { %v3629_v45 = vadd.f32 %v3441_v7, %v974_v21  ;;  %v2659_v21 = vld [vmem:[#allocation11] sm:$0xff] }
 0x1b8   : > { %v1115_v53 = vmul.f32 %v3626_v30, %v3626_v30  ;;  %1718 = vmatpush.bf16.msrb.mxu0 %v2659_v21 }
 0x1b9   : > { %v1058_v60 = vadd.f32 %v3629_v45, %v3626_v30  ;;  %v1116_v61 = vmul.f32 %v3629_v45, %v3629_v45 }
 0x1bb   : > { %1059 = vadd.xlane.f32.xlu1 %v1058_v60  ;;  %v926_v32 = vpop.f32.mrf.mxu2  ;;  %v1161_v33 = vadd.f32 %v1116_v61, %v1115_v53 }
 0x1bc   : > { %v927_v44 = vadd.f32 %v926_v32, %v3432_v0  ;;  %v975_v47 = vpop.f32.mrf.mxu3  ;;  %v2669_v0 = vld [vmem:[#allocation11 + $0x50] sm:$0xff] }
 0x1bd   : > { %v976_v48 = vadd.f32 %v975_v47, %v3434_v1  ;;  %1162 = vadd.xlane.f32.xlu0 %v1161_v33  ;;  %1765 = vmatpush.bf16.msrb.mxu1 %v2669_v0 }
 0x1be   : > { %v3642_v56 = vadd.f32 %v3439_v5, %v927_v44  ;;  %v1018_v54 = vpop.xlane.xlu0 %1017 }
 0x1bf   : > { %v3645_v63 = vadd.f32 %v3441_v7, %v976_v48  ;;  %v3648_v2 = vmul.f32 %v3638_v55, %v1018_v54 }
 0x1c0   : > { %v1121_v16 = vpop.xlane.xlu1 %1120  ;;  %v1117_v49 = vmul.f32 %v3642_v56, %v3642_v56 }
 0x1c1   : > { %v1167_v1 = vmul.f32 %v1121_v16, %v3638_v55  ;;  %v1183_v5 = vmul.f32 %v3648_v2, %v3648_v2  ;;  %v1061_v17 = vadd.f32 %v3645_v63, %v3642_v56  ;;  %v1118_v7 = vmul.f32 %v3645_v63, %v3645_v63  ;;  %1766 = vmatpush.bf16.msrb.mxu1 %v2668_v51 }
 0x1c3   : > { %v1199_v50 = vsub.f32 %v1167_v1, %v1183_v5  ;;  %1062 = vadd.xlane.f32.xlu2 %v1061_v17  ;;  %v1164_v58 = vadd.f32 %v1118_v7, %v1117_v49  ;;  %v1215_v5 = vld [vmem:[%s4039_s5] sm:$0x3] }
 0x1c5   : > { %v1216_v18 = vadd.f32 1e-05, %v1199_v50  ;;  %1165 = vadd.xlane.f32.xlu1 %v1164_v58  ;;  %1767 = vmatpush.bf16.msrb.mxu1 %v2667_v31 }
 0x1c6   : > { %v1021_v19 = vpop.xlane.xlu0 %1020 }
 0x1c7   : > { %2794 = vrsqrt.f32 %v1216_v18  ;;  %v3660_v20 = vmul.f32 %v3638_v55, %v1021_v19  ;;  %vm1238_vm2 = vweird.f32 %v1216_v18  ;;  %v3680_v19 = vperm.slane %v1215_v5, 0 }
 0x1c8   : > { %v1124_v52 = vpop.xlane.xlu1 %1123 }
 0x1c9   : > { %v1168_v53 = vmul.f32 %v1124_v52, %v3638_v55  ;;  %v1184_v46 = vmul.f32 %v3660_v20, %v3660_v20 }
 0x1cb   : > { %v1200_v60 = vsub.f32 %v1168_v53, %v1184_v46  ;;  %v3685_v46 = vperm.slane %v1215_v5, 1 }
 0x1cd   : > { %v2795_v61 = vpop.eup %2794  ;;  %v1217_v32 = vadd.f32 1e-05, %v1200_v60 }
 0x1ce   : > { %v1233_v33 = vmul.f32 %v2795_v61, %v1216_v18  ;;  %v1024_v34 = vpop.xlane.xlu2 %1023  ;;  %vm1239_vm1 = vweird.f32 %v2795_v61 }
 0x1cf   : > { %2796 = vrsqrt.f32 %v1217_v32  ;;  %v3666_v37 = vmul.f32 %v3638_v55, %v1024_v34  ;;  %vm1240_vm3 = vmor %vm1238_vm2, %vm1239_vm1  ;;  %v1493_v34 = vld [vmem:[#allocation10] sm:$0x3]  ;;  %vm1248_vm5 = vweird.f32 %v1217_v32 }
 0x1d0   : > { %v1234_v44 = vmul.f32 %v2795_v61, %v1233_v33  ;;  %v1127_v47 = vpop.xlane.xlu0 %1126  ;;  %v3698_v5 = vperm.slane %v1493_v34, 0 }
 0x1d1   : > { %v1185_v48 = vmul.f32 %v3666_v37, %v3666_v37  ;;  %v1169_v54 = vmul.f32 %v1127_v47, %v3638_v55  ;;  %v1429_v47 = vsub.f32 %v3444_v11, %v3648_v2  ;;  %v1430_v11 = vsub.f32 %v3447_v12, %v3648_v2 }
 0x1d2   : > { %v1235_v3 = vmul.f32 0.5, %v1234_v44 }
 0x1d3   : > { %v1201_v0 = vsub.f32 %v1169_v54, %v1185_v48 }
 0x1d4   : > { %v1236_v16 = vsub.f32 1.5, %v1235_v3 }
 0x1d5   : > { %v2797_v49 = vpop.eup %2796  ;;  %v3671_v1 = vadd.f32 1e-05, %v1201_v0 }
 0x1d6   : > { %v1237_v17 = vmul.f32 %v2795_v61, %v1236_v16  ;;  %v1243_v7 = vmul.f32 %v2797_v49, %v1217_v32  ;;  %v1027_v50 = vpop.xlane.xlu2 %1026  ;;  %vm1249_vm4 = vweird.f32 %v2797_v49 }
 0x1d7   : > { %2798 = vrsqrt.f32 %v3671_v1  ;;  %v3678_v57 = vmul.f32 %v3638_v55, %v1027_v50  ;;  %vm1250_vm6 = vmor %vm1248_vm5, %vm1249_vm4  ;;  %vm1258_vm8 = vweird.f32 %v3671_v1 }
 0x1d8   : > { %v1244_v51 = vmul.f32 %v2797_v49, %v1243_v7  ;;  %v1130_v58 = vpop.xlane.xlu1 %1129  ;;  %v1241_v21 = vsel %vm1240_vm3, %v2795_v61, %v1237_v17  ;;  %v3700_v17 = vperm.slane %v1493_v34, 1 }
 0x1d9   : > { %v1186_v31 = vmul.f32 %v3678_v57, %v3678_v57  ;;  %v1170_v52 = vmul.f32 %v1130_v58, %v3638_v55  ;;  %v1397_v33 = vmul.f32 %v3680_v19, %v1241_v21  ;;  %v1398_v0 = vmul.f32 %v3685_v46, %v1241_v21 }
 0x1da   : > { %v1245_v53 = vmul.f32 0.5, %v1244_v51  ;;  %v1431_v58 = vsub.f32 %v3456_v23, %v3660_v20  ;;  %v1432_v21 = vsub.f32 %v3459_v24, %v3660_v20 }
 0x1db   : > { %v1202_v18 = vsub.f32 %v1170_v52, %v1186_v31  ;;  %v1461_v51 = vmul.f32 %v1429_v47, %v1397_v33  ;;  %v1462_v2 = vmul.f32 %v1430_v11, %v1398_v0 }
 0x1dc   : > { %v1246_v60 = vsub.f32 1.5, %v1245_v53 }
 0x1dd   : > { %v2799_v44 = vpop.eup %2798  ;;  %v3690_v48 = vadd.f32 1e-05, %v1202_v18  ;;  %v1499_v34 = vadd.f32 %v3698_v5, %v1461_v51 }
 0x1de   : > { %v1247_v61 = vmul.f32 %v2797_v49, %v1246_v60  ;;  %v1253_v54 = vmul.f32 %v2799_v44, %v3671_v1  ;;  %v1030_v3 = vpop.xlane.xlu2 %1029  ;;  %vm1259_vm7 = vweird.f32 %v2799_v44 }
 0x1df   : > { %2800 = vrsqrt.f32 %v3690_v48  ;;  %v3696_v16 = vmul.f32 %v3638_v55, %v1030_v3  ;;  %vm1260_vm9 = vmor %vm1258_vm8, %vm1259_vm7  ;;  %v1531_v51 = vmax.f32 %v1499_v34, 0.0  ;;  %v1433_v34 = vsub.f32 %v3468_v35, %v3666_v37 }
 0x1e0   : > { %v1251_v7 = vsel %vm1250_vm6, %v2797_v49, %v1247_v61  ;;  %v1254_v32 = vmul.f32 %v2799_v44, %v1253_v54  ;;  %v1133_v50 = vpop.xlane.xlu1 %1132  ;;  %vm1268_vm11 = vweird.f32 %v3690_v48  ;;  %v1434_v35 = vsub.f32 %v3471_v36, %v3666_v37 }
 0x1e1   : > { %v1187_v31 = vmul.f32 %v3696_v16, %v3696_v16  ;;  %v1171_v52 = vmul.f32 %v1133_v50, %v3638_v55  ;;  %v1399_v18 = vmul.f32 %v3680_v19, %v1251_v7  ;;  %v1400_v12 = vmul.f32 %v3685_v46, %v1251_v7 }
 0x1e2   : > { %v1255_v53 = vmul.f32 0.5, %v1254_v32  ;;  %v1500_v32 = vadd.f32 %v3700_v17, %v1462_v2 }
 0x1e3   : > { %v1203_v49 = vsub.f32 %v1171_v52, %v1187_v31  ;;  %v1463_v33 = vmul.f32 %v1431_v58, %v1399_v18  ;;  %v1464_v23 = vmul.f32 %v1432_v21, %v1400_v12 }
 0x1e4   : > { %v1256_v60 = vsub.f32 1.5, %v1255_v53  ;;  %v1532_v18 = vmax.f32 %v1500_v32, 0.0 }
 0x1e5   : > { %v2801_v47 = vpop.eup %2800  ;;  %v3714_v24 = vadd.f32 1e-05, %v1203_v49  ;;  %v1501_v3 = vadd.f32 %v3698_v5, %v1463_v33  ;;  %v1502_v11 = vadd.f32 %v3700_v17, %v1464_v23 }
 0x1e6   : > { %v1257_v20 = vmul.f32 %v2799_v44, %v1256_v60  ;;  %v1263_v61 = vmul.f32 %v2801_v47, %v3690_v48  ;;  %v1033_v54 = vpop.xlane.xlu0 %1032  ;;  %vm1269_vm10 = vweird.f32 %v2801_v47  ;;  %v1435_v48 = vsub.f32 %v3480_v59, %v3678_v57 }
 0x1e7   : > { %2802 = vrsqrt.f32 %v3714_v24  ;;  %v3722_v0 = vmul.f32 %v3638_v55, %v1033_v54  ;;  %v1533_v58 = vmax.f32 %v1501_v3, 0.0  ;;  %v1534_v12 = vmax.f32 %v1502_v11, 0.0  ;;  %vm1270_vm12 = vmor %vm1268_vm11, %vm1269_vm10 }
 0x1e8   : > { %v1264_v7 = vmul.f32 %v2801_v47, %v1263_v61  ;;  %v1136_v50 = vpop.xlane.xlu2 %1135  ;;  %v1261_v52 = vsel %vm1260_vm9, %v2799_v44, %v1257_v20  ;;  %vm1278_vm14 = vweird.f32 %v3714_v24 }
 0x1e9   : > { %v1172_v21 = vmul.f32 %v1136_v50, %v3638_v55  ;;  %v1188_v31 = vmul.f32 %v3722_v0, %v3722_v0  ;;  %v1563_v1 = vpack.c.bf16 %v1533_v58, %v1531_v51  ;;  %v1564_v60 = vpack.c.bf16 %v1534_v12, %v1532_v18 }
 0x1ea   : > { %v1265_v53 = vmul.f32 0.5, %v1264_v7  ;;  %v1401_v33 = vmul.f32 %v3680_v19, %v1261_v52  ;;  %v1402_v3 = vmul.f32 %v3685_v46, %v1261_v52  ;;  %v1436_v58 = vsub.f32 %v3483_v62, %v3678_v57 }
 0x1eb   : > { %v1204_v2 = vsub.f32 %v1172_v21, %v1188_v31  ;;  %1719 = vmatmul.bf16.vlgmr.msrb.gmra.mxu0 %v1563_v1  ;;  %1768 = vmatmul.bf16.vlgmr.msrb.gmra.mxu1 %v1564_v60 }
 0x1ec   : > { %v1266_v49 = vsub.f32 1.5, %v1265_v53  ;;  %v1465_v51 = vmul.f32 %v1433_v34, %v1401_v33  ;;  %v1466_v37 = vmul.f32 %v1434_v35, %v1402_v3 }
 0x1ed   : > { %v2803_v23 = vpop.eup %2802  ;;  %v3731_v61 = vadd.f32 1e-05, %v1204_v2 }
 0x1ee   : > { %v1267_v54 = vmul.f32 %v2801_v47, %v1266_v49  ;;  %v1273_v44 = vmul.f32 %v2803_v23, %v3714_v24  ;;  %v1036_v20 = vpop.xlane.xlu0 %1035  ;;  %v1503_v12 = vadd.f32 %v3698_v5, %v1465_v51  ;;  %vm1279_vm13 = vweird.f32 %v2803_v23 }
 0x1ef   : > { %2804 = vrsqrt.f32 %v3731_v61  ;;  %v3738_v32 = vmul.f32 %v3638_v55, %v1036_v20  ;;  %v1504_v34 = vadd.f32 %v3700_v17, %v1466_v37  ;;  %vm1280_vm15 = vmor %vm1278_vm14, %vm1279_vm13  ;;  %vm1288_vm1 = vweird.f32 %v3731_v61 }
 0x1f0   : > { %v1274_v11 = vmul.f32 %v2803_v23, %v1273_v44  ;;  %v1139_v7 = vpop.xlane.xlu2 %1138  ;;  %v1271_v50 = vsel %vm1270_vm12, %v2801_v47, %v1267_v54  ;;  %v1535_v35 = vmax.f32 %v1503_v12, 0.0 }
 0x1f1   : > { %v1173_v21 = vmul.f32 %v1139_v7, %v3638_v55  ;;  %v1189_v31 = vmul.f32 %v3738_v32, %v3738_v32  ;;  %v1403_v53 = vmul.f32 %v3680_v19, %v1271_v50  ;;  %v1404_v36 = vmul.f32 %v3685_v46, %v1271_v50 }
 0x1f2   : > { %v1275_v52 = vmul.f32 0.5, %v1274_v11 }
 0x1f3   : > { %v1205_v1 = vsub.f32 %v1173_v21, %v1189_v31  ;;  %v1467_v18 = vmul.f32 %v1435_v48, %v1403_v53  ;;  %v1468_v59 = vmul.f32 %v1436_v58, %v1404_v36  ;;  %v1536_v58 = vmax.f32 %v1504_v34, 0.0 }
 0x1f4   : > { %v1276_v47 = vsub.f32 1.5, %v1275_v52 }
 0x1f5   : > { %v2805_v2 = vpop.eup %2804  ;;  %v3752_v62 = vadd.f32 1e-05, %v1205_v1  ;;  %v1505_v33 = vadd.f32 %v3698_v5, %v1467_v18  ;;  %v1506_v44 = vadd.f32 %v3700_v17, %v1468_v59  ;;  %v1437_v1 = vsub.f32 %v3492_v13, %v3696_v16 }
 0x1f6   : > { %v1277_v57 = vmul.f32 %v2803_v23, %v1276_v47  ;;  %v1283_v49 = vmul.f32 %v2805_v2, %v3731_v61  ;;  %v1039_v60 = vpop.xlane.xlu1 %1038  ;;  %vm1289_vm0 = vweird.f32 %v2805_v2  ;;  %v1438_v13 = vsub.f32 %v3495_v15, %v3696_v16 }
 0x1f7   : > { %2806 = vrsqrt.f32 %v3752_v62  ;;  %v3760_v54 = vmul.f32 %v3638_v55, %v1039_v60  ;;  %v1537_v11 = vmax.f32 %v1505_v33, 0.0  ;;  %v1538_v21 = vmax.f32 %v1506_v44, 0.0  ;;  %vm1290_vm2 = vmor %vm1288_vm1, %vm1289_vm0 }
 0x1f8   : > { %v1284_v20 = vmul.f32 %v2805_v2, %v1283_v49  ;;  %v1142_v3 = vpop.xlane.xlu0 %1141  ;;  %v1281_v51 = vsel %vm1280_vm15, %v2803_v23, %v1277_v57  ;;  %v1439_v61 = vsub.f32 %v3504_v27, %v3722_v0  ;;  %v1440_v44 = vsub.f32 %v3507_v28, %v3722_v0 }
 0x1f9   : > { %v1190_v7 = vmul.f32 %v3760_v54, %v3760_v54  ;;  %v1174_v50 = vmul.f32 %v1142_v3, %v3638_v55  ;;  %v1565_v24 = vpack.c.bf16 %v1537_v11, %v1535_v35  ;;  %v1566_v53 = vpack.c.bf16 %v1538_v21, %v1536_v58 }
 0x1fa   : > { %v1285_v48 = vmul.f32 0.5, %v1284_v20  ;;  %v1405_v36 = vmul.f32 %v3680_v19, %v1281_v51  ;;  %v1406_v59 = vmul.f32 %v3685_v46, %v1281_v51  ;;  %vm1298_vm4 = vweird.f32 %v3752_v62 }
 0x1fb   : > { %v1206_v31 = vsub.f32 %v1174_v50, %v1190_v7  ;;  %1724 = vmatmul.bf16.gmra.mxu0 %v1565_v24  ;;  %1773 = vmatmul.bf16.gmra.mxu1 %v1566_v53 }
 0x1fc   : > { %v1286_v52 = vsub.f32 1.5, %v1285_v48  ;;  %v1469_v34 = vmul.f32 %v1437_v1, %v1405_v36  ;;  %v1470_v16 = vmul.f32 %v1438_v13, %v1406_v59 }
 0x1fd   : > { %v2807_v37 = vpop.eup %2806  ;;  %v3769_v47 = vadd.f32 1e-05, %v1206_v31 }
 0x1fe   : > { %v1287_v18 = vmul.f32 %v2805_v2, %v1286_v52  ;;  %v1293_v23 = vmul.f32 %v2807_v37, %v3752_v62  ;;  %v1042_v12 = vpop.xlane.xlu1 %1041  ;;  %v1507_v51 = vadd.f32 %v3698_v5, %v1469_v34  ;;  %vm1299_vm3 = vweird.f32 %v2807_v37 }
 0x1ff   : > { %2808 = vrsqrt.f32 %v3769_v47  ;;  %v3776_v57 = vmul.f32 %v3638_v55, %v1042_v12  ;;  %v1508_v31 = vadd.f32 %v3700_v17, %v1470_v16  ;;  %vm1300_vm5 = vmor %vm1298_vm4, %vm1299_vm3  ;;  %vm1308_vm7 = vweird.f32 %v3769_v47 }
 0x200   : > { %v1294_v49 = vmul.f32 %v2807_v37, %v1293_v23  ;;  %v1145_v60 = vpop.xlane.xlu0 %1144  ;;  %v1291_v33 = vsel %vm1290_vm2, %v2805_v2, %v1287_v18  ;;  %v1539_v18 = vmax.f32 %v1507_v51, 0.0 }
 0x201   : > { %v1191_v20 = vmul.f32 %v3776_v57, %v3776_v57  ;;  %v1175_v3 = vmul.f32 %v1145_v60, %v3638_v55  ;;  %v1407_v11 = vmul.f32 %v3680_v19, %v1291_v33  ;;  %v1408_v15 = vmul.f32 %v3685_v46, %v1291_v33 }
 0x202   : > { %v1295_v35 = vmul.f32 0.5, %v1294_v49  ;;  %v1540_v60 = vmax.f32 %v1508_v31, 0.0 }
 0x203   : > { %v1207_v7 = vsub.f32 %v1175_v3, %v1191_v20  ;;  %v1471_v50 = vmul.f32 %v1439_v61, %v1407_v11  ;;  %v1472_v27 = vmul.f32 %v1440_v44, %v1408_v15 }
 0x204   : > { %v1296_v2 = vsub.f32 1.5, %v1295_v35  ;;  %v1441_v35 = vsub.f32 %v3516_v41, %v3738_v32  ;;  %v1442_v41 = vsub.f32 %v3519_v42, %v3738_v32 }
 0x205   : > { %v2809_v48 = vpop.eup %2808  ;;  %v3790_v28 = vadd.f32 1e-05, %v1207_v7  ;;  %v1509_v21 = vadd.f32 %v3698_v5, %v1471_v50  ;;  %v1510_v53 = vadd.f32 %v3700_v17, %v1472_v27 }
 0x206   : > { %v1297_v0 = vmul.f32 %v2807_v37, %v1296_v2  ;;  %v1303_v24 = vmul.f32 %v2809_v48, %v3769_v47  ;;  %v1045_v58 = vpop.xlane.xlu2 %1044  ;;  %vm1309_vm6 = vweird.f32 %v2809_v48  ;;  %v1443_v47 = vsub.f32 %v3528_v9, %v3760_v54 }
 0x207   : > { %2810 = vrsqrt.f32 %v3790_v28  ;;  %v3798_v52 = vmul.f32 %v3638_v55, %v1045_v58  ;;  %v1541_v23 = vmax.f32 %v1509_v21, 0.0  ;;  %v1542_v33 = vmax.f32 %v1510_v53, 0.0  ;;  %vm1310_vm8 = vmor %vm1308_vm7, %vm1309_vm6 }
 0x208   : > { %v1304_v36 = vmul.f32 %v2809_v48, %v1303_v24  ;;  %v1148_v1 = vpop.xlane.xlu1 %1147  ;;  %v1301_v13 = vsel %vm1300_vm5, %v2807_v37, %v1297_v0  ;;  %v1444_v24 = vsub.f32 %v3531_v10, %v3760_v54  ;;  %vm1318_vm10 = vweird.f32 %v3790_v28 }
 0x209   : > { %v1192_v12 = vmul.f32 %v3798_v52, %v3798_v52  ;;  %v1176_v59 = vmul.f32 %v1148_v1, %v3638_v55  ;;  %v1567_v62 = vpack.c.bf16 %v1541_v23, %v1539_v18  ;;  %v1568_v44 = vpack.c.bf16 %v1542_v33, %v1540_v60 }
 0x20a   : > { %v1305_v49 = vmul.f32 0.5, %v1304_v36  ;;  %v1409_v20 = vmul.f32 %v3680_v19, %v1301_v13  ;;  %v1410_v7 = vmul.f32 %v3685_v46, %v1301_v13 }
 0x20b   : > { %v1208_v34 = vsub.f32 %v1176_v59, %v1192_v12  ;;  %1729 = vmatmul.bf16.gmra.mxu0 %v1567_v62  ;;  %1778 = vmatmul.bf16.gmra.mxu1 %v1568_v44 }
 0x20c   : > { %v1306_v61 = vsub.f32 1.5, %v1305_v49  ;;  %v1473_v0 = vmul.f32 %v1441_v35, %v1409_v20  ;;  %v1474_v32 = vmul.f32 %v1442_v41, %v1410_v7 }
 0x20d   : > { %v2811_v3 = vpop.eup %2810  ;;  %v3807_v11 = vadd.f32 1e-05, %v1208_v34 }
 0x20e   : > { %v1307_v15 = vmul.f32 %v2809_v48, %v1306_v61  ;;  %v1313_v37 = vmul.f32 %v2811_v3, %v3790_v28  ;;  %v1048_v16 = vpop.xlane.xlu2 %1047  ;;  %v1511_v18 = vadd.f32 %v3698_v5, %v1473_v0  ;;  %vm1319_vm9 = vweird.f32 %v2811_v3 }
 0x20f   : > { %2812 = vrsqrt.f32 %v3807_v11  ;;  %v3814_v2 = vmul.f32 %v3638_v55, %v1048_v16  ;;  %v1512_v49 = vadd.f32 %v3700_v17, %v1474_v32  ;;  %vm1320_vm11 = vmor %vm1318_vm10, %vm1319_vm9  ;;  %vm1328_vm13 = vweird.f32 %v3807_v11 }
 0x210   : > { %v1314_v50 = vmul.f32 %v2811_v3, %v1313_v37  ;;  %v1151_v51 = vpop.xlane.xlu1 %1150  ;;  %v1311_v27 = vsel %vm1310_vm8, %v2809_v48, %v1307_v15  ;;  %v1543_v61 = vmax.f32 %v1511_v18, 0.0 }
 0x211   : > { %v1193_v58 = vmul.f32 %v3814_v2, %v3814_v2  ;;  %v1177_v21 = vmul.f32 %v1151_v51, %v3638_v55  ;;  %v1411_v53 = vmul.f32 %v3680_v19, %v1311_v27  ;;  %v1412_v42 = vmul.f32 %v3685_v46, %v1311_v27 }
 0x212   : > { %v1315_v31 = vmul.f32 0.5, %v1314_v50  ;;  %v1544_v16 = vmax.f32 %v1512_v49, 0.0 }
 0x213   : > { %v1209_v36 = vsub.f32 %v1177_v21, %v1193_v58  ;;  %v1475_v1 = vmul.f32 %v1443_v47, %v1411_v53  ;;  %v1476_v9 = vmul.f32 %v1444_v24, %v1412_v42  ;;  %v1445_v58 = vsub.f32 %v3542_v25, %v3776_v57 }
 0x214   : > { %v1316_v48 = vsub.f32 1.5, %v1315_v31  ;;  %v1446_v53 = vsub.f32 %v3545_v26, %v3776_v57  ;;  %v1448_v26 = vsub.f32 %v3559_v39, %v3798_v52 }
 0x215   : > { %v2813_v23 = vpop.eup %2812  ;;  %v3828_v10 = vadd.f32 1e-05, %v1209_v36  ;;  %v1513_v13 = vadd.f32 %v3698_v5, %v1475_v1  ;;  %v1514_v60 = vadd.f32 %v3700_v17, %v1476_v9 }
 0x216   : > { %v1317_v54 = vmul.f32 %v2811_v3, %v1316_v48  ;;  %v1323_v12 = vmul.f32 %v2813_v23, %v3807_v11  ;;  %v1051_v59 = vpop.xlane.xlu0 %1050  ;;  %vm1329_vm12 = vweird.f32 %v2813_v23  ;;  %v1447_v11 = vsub.f32 %v3556_v38, %v3798_v52 }
 0x217   : > { %2814 = vrsqrt.f32 %v3828_v10  ;;  %v3836_v62 = vmul.f32 %v3638_v55, %v1051_v59  ;;  %v1545_v44 = vmax.f32 %v1513_v13, 0.0  ;;  %v1546_v7 = vmax.f32 %v1514_v60, 0.0  ;;  %vm1330_vm14 = vmor %vm1328_vm13, %vm1329_vm12 }
 0x218   : > { %v1324_v33 = vmul.f32 %v2813_v23, %v1323_v12  ;;  %v1154_v34 = vpop.xlane.xlu2 %1153  ;;  %v1321_v15 = vsel %vm1320_vm11, %v2811_v3, %v1317_v54  ;;  %vm1338_vm0 = vweird.f32 %v3828_v10 }
 0x219   : > { %v1178_v20 = vmul.f32 %v1154_v34, %v3638_v55  ;;  %v1194_v35 = vmul.f32 %v3836_v62, %v3836_v62  ;;  %v1569_v28 = vpack.c.bf16 %v1545_v44, %v1543_v61  ;;  %v1570_v51 = vpack.c.bf16 %v1546_v7, %v1544_v16 }
 0x21a   : > { %v1325_v37 = vmul.f32 0.5, %v1324_v33  ;;  %v1413_v27 = vmul.f32 %v3680_v19, %v1321_v15  ;;  %v1414_v24 = vmul.f32 %v3685_v46, %v1321_v15 }
 0x21b   : > { %v1210_v41 = vsub.f32 %v1178_v20, %v1194_v35  ;;  %1734 = vmatmul.bf16.gmra.mxu0 %v1569_v28  ;;  %1783 = vmatmul.bf16.gmra.mxu1 %v1570_v51 }
 0x21c   : > { %v1326_v50 = vsub.f32 1.5, %v1325_v37  ;;  %v1477_v25 = vmul.f32 %v1445_v58, %v1413_v27  ;;  %v1478_v9 = vmul.f32 %v1446_v53, %v1414_v24 }
 0x21d   : > { %v2815_v0 = vpop.eup %2814  ;;  %v3843_v47 = vadd.f32 1e-05, %v1210_v41 }
 0x21e   : > { %v1327_v3 = vmul.f32 %v2813_v23, %v1326_v50  ;;  %v1333_v21 = vmul.f32 %v2815_v0, %v3828_v10  ;;  %v1054_v31 = vpop.xlane.xlu0 %1053  ;;  %v1515_v49 = vadd.f32 %v3698_v5, %v1477_v25  ;;  %v1516_v34 = vadd.f32 %v3700_v17, %v1478_v9 }
 0x21f   : > { %2816 = vrsqrt.f32 %v3843_v47  ;;  %v3854_v42 = vmul.f32 %v3638_v55, %v1054_v31  ;;  %vm1339_vm15 = vweird.f32 %v2815_v0  ;;  %vm1348_vm3 = vweird.f32 %v3843_v47 }
 0x220   : > { %v1334_v32 = vmul.f32 %v2815_v0, %v1333_v21  ;;  %v1157_v36 = vpop.xlane.xlu2 %1156  ;;  %v1331_v48 = vsel %vm1330_vm14, %v2813_v23, %v1327_v3  ;;  %v1547_v28 = vmax.f32 %v1515_v49, 0.0  ;;  %vm1340_vm1 = vmor %vm1338_vm0, %vm1339_vm15  ;;  %v1548_v50 = vmax.f32 %v1516_v34, 0.0 }
 0x221   : > { %v1179_v1 = vmul.f32 %v1157_v36, %v3638_v55  ;;  %v1195_v18 = vmul.f32 %v3854_v42, %v3854_v42  ;;  %v1415_v54 = vmul.f32 %v3680_v19, %v1331_v48  ;;  %v1416_v12 = vmul.f32 %v3685_v46, %v1331_v48 }
 0x222   : > { %v1335_v57 = vmul.f32 0.5, %v1334_v32  ;;  %v1451_v9 = vsub.f32 %v3584_v22, %v3836_v62 }
 0x223   : > { %v1211_v59 = vsub.f32 %v1179_v1, %v1195_v18  ;;  %v1479_v13 = vmul.f32 %v1447_v11, %v1415_v54  ;;  %v1480_v38 = vmul.f32 %v1448_v26, %v1416_v12  ;;  %v1450_v1 = vsub.f32 %v3573_v6, %v3814_v2 }
 0x224   : > { %v1336_v23 = vsub.f32 1.5, %v1335_v57  ;;  %v1452_v6 = vsub.f32 %v3587_v29, %v3836_v62 }
 0x225   : > { %v2817_v60 = vpop.eup %2816  ;;  %v3866_v33 = vadd.f32 1e-05, %v1211_v59  ;;  %v1517_v44 = vadd.f32 %v3698_v5, %v1479_v13  ;;  %v1518_v35 = vadd.f32 %v3700_v17, %v1480_v38 }
 0x226   : > { %v1337_v61 = vmul.f32 %v2815_v0, %v1336_v23  ;;  %v1343_v39 = vmul.f32 %v2817_v60, %v3843_v47  ;;  %v1057_v52 = vpop.xlane.xlu1 %1056  ;;  %vm1349_vm2 = vweird.f32 %v2817_v60 }
 0x227   : > { %2818 = vrsqrt.f32 %v3866_v33  ;;  %v3873_v20 = vmul.f32 %v3638_v55, %v1057_v52  ;;  %v1549_v16 = vmax.f32 %v1517_v44, 0.0  ;;  %v1550_v24 = vmax.f32 %v1518_v35, 0.0  ;;  %vm1350_vm4 = vmor %vm1348_vm3, %vm1349_vm2 }
 0x228   : > { %v1344_v15 = vmul.f32 %v2817_v60, %v1343_v39  ;;  %v1160_v37 = vpop.xlane.xlu0 %1159  ;;  %v1341_v58 = vsel %vm1340_vm1, %v2815_v0, %v1337_v61  ;;  %v1449_v0 = vsub.f32 %v3570_v4, %v3814_v2  ;;  %vm1358_vm6 = vweird.f32 %v3866_v33 }
 0x229   : > { %v1196_v7 = vmul.f32 %v3873_v20, %v3873_v20  ;;  %v1180_v41 = vmul.f32 %v1160_v37, %v3638_v55  ;;  %v1571_v27 = vpack.c.bf16 %v1549_v16, %v1547_v28  ;;  %v1572_v10 = vpack.c.bf16 %v1550_v24, %v1548_v50 }
 0x22a   : > { %v1345_v51 = vmul.f32 0.5, %v1344_v15  ;;  %v1417_v32 = vmul.f32 %v3680_v19, %v1341_v58  ;;  %v1418_v36 = vmul.f32 %v3685_v46, %v1341_v58 }
 0x22b   : > { %v1212_v3 = vsub.f32 %v1180_v41, %v1196_v7  ;;  %1739 = vmatmul.bf16.gmra.mxu0 %v1571_v27  ;;  %1788 = vmatmul.bf16.gmra.mxu1 %v1572_v10 }
 0x22c   : > { %v1346_v21 = vsub.f32 1.5, %v1345_v51  ;;  %v1481_v12 = vmul.f32 %v1449_v0, %v1417_v32  ;;  %v1482_v59 = vmul.f32 %v1450_v1, %v1418_v36 }
 0x22d   : > { %v2819_v31 = vpop.eup %2818  ;;  %v3880_v53 = vadd.f32 1e-05, %v1212_v3 }
 0x22e   : > { %v1347_v48 = vmul.f32 %v2817_v60, %v1346_v21  ;;  %v1353_v25 = vmul.f32 %v2819_v31, %v3866_v33  ;;  %v1060_v11 = vpop.xlane.xlu1 %1059  ;;  %vm1359_vm5 = vweird.f32 %v2819_v31  ;;  %v1519_v39 = vadd.f32 %v3698_v5, %v1481_v12 }
 0x22f   : > { %2820 = vrsqrt.f32 %v3880_v53  ;;  %v3892_v18 = vmul.f32 %v3638_v55, %v1060_v11  ;;  %v1520_v52 = vadd.f32 %v3700_v17, %v1482_v59  ;;  %vm1360_vm7 = vmor %vm1358_vm6, %vm1359_vm5  ;;  %v1454_v11 = vsub.f32 %v3601_v43, %v3854_v42 }
 0x230   : > { %v1354_v47 = vmul.f32 %v2819_v31, %v1353_v25  ;;  %v1163_v26 = vpop.xlane.xlu0 %1162  ;;  %v1351_v57 = vsel %vm1350_vm4, %v2817_v60, %v1347_v48  ;;  %v1551_v50 = vmax.f32 %v1519_v39, 0.0  ;;  %vm1368_vm9 = vweird.f32 %v3880_v53 }
 0x231   : > { %v1197_v54 = vmul.f32 %v3892_v18, %v3892_v18  ;;  %v1181_v4 = vmul.f32 %v1163_v26, %v3638_v55  ;;  %v1419_v23 = vmul.f32 %v3680_v19, %v1351_v57  ;;  %v1420_v13 = vmul.f32 %v3685_v46, %v1351_v57 }
 0x232   : > { %v1355_v2 = vmul.f32 0.5, %v1354_v47  ;;  %v1552_v51 = vmax.f32 %v1520_v52, 0.0  ;;  %v1455_v47 = vsub.f32 %v3612_v8, %v3873_v20 }
 0x233   : > { %v1213_v49 = vsub.f32 %v1181_v4, %v1197_v54  ;;  %v1483_v38 = vmul.f32 %v1451_v9, %v1419_v23  ;;  %v1484_v60 = vmul.f32 %v1452_v6, %v1420_v13  ;;  %v1456_v54 = vsub.f32 %v3615_v14, %v3873_v20 }
 0x234   : > { %v1356_v22 = vsub.f32 1.5, %v1355_v2 }
 0x235   : > { %v2821_v34 = vpop.eup %2820  ;;  %v3903_v61 = vadd.f32 1e-05, %v1213_v49  ;;  %v1521_v62 = vadd.f32 %v3698_v5, %v1483_v38  ;;  %v1522_v15 = vadd.f32 %v3700_v17, %v1484_v60 }
 0x236   : > { %v1357_v44 = vmul.f32 %v2819_v31, %v1356_v22  ;;  %v1363_v29 = vmul.f32 %v2821_v34, %v3880_v53  ;;  %v1063_v35 = vpop.xlane.xlu2 %1062  ;;  %vm1369_vm8 = vweird.f32 %v2821_v34 }
 0x237   : > { %2822 = vrsqrt.f32 %v3903_v61  ;;  %v3913_v28 = vmul.f32 %v3638_v55, %v1063_v35  ;;  %v1553_v16 = vmax.f32 %v1521_v62, 0.0  ;;  %v1554_v33 = vmax.f32 %v1522_v15, 0.0  ;;  %vm1370_vm10 = vmor %vm1368_vm9, %vm1369_vm8 }
 0x238   : > { %v1364_v37 = vmul.f32 %v2821_v34, %v1363_v29  ;;  %v1361_v7 = vsel %vm1360_vm7, %v2819_v31, %v1357_v44  ;;  %v1166_v41 = vpop.xlane.xlu1 %1165  ;;  %v1453_v31 = vsub.f32 %v3598_v40, %v3854_v42  ;;  %vm1378_vm12 = vweird.f32 %v3903_v61 }
 0x239   : > { %v1198_v24 = vmul.f32 %v3913_v28, %v3913_v28  ;;  %v1182_v58 = vmul.f32 %v1166_v41, %v3638_v55  ;;  %v1573_v3 = vpack.c.bf16 %v1553_v16, %v1551_v50  ;;  %v1574_v21 = vpack.c.bf16 %v1554_v33, %v1552_v51 }
 0x23a   : > { %v1365_v27 = vmul.f32 0.5, %v1364_v37  ;;  %v1421_v10 = vmul.f32 %v3680_v19, %v1361_v7  ;;  %v1422_v36 = vmul.f32 %v3685_v46, %v1361_v7  ;;  %v1457_v37 = vsub.f32 %v3626_v30, %v3892_v18 }
 0x23b   : > { %v1214_v25 = vsub.f32 %v1182_v58, %v1198_v24  ;;  %1744 = vmatmul.bf16.gmra.mxu0 %v1573_v3  ;;  %1793 = vmatmul.bf16.gmra.mxu1 %v1574_v21  ;;  %v1459_v51 = vsub.f32 %v3642_v56, %v3913_v28  ;;  %v1460_v33 = vsub.f32 %v3645_v63, %v3913_v28 }
 0x23c   : > { %v1366_v32 = vsub.f32 1.5, %v1365_v27  ;;  %v1485_v9 = vmul.f32 %v1453_v31, %v1421_v10  ;;  %v1486_v40 = vmul.f32 %v1454_v11, %v1422_v36 }
 0x23d   : > { %v2823_v48 = vpop.eup %2822  ;;  %v1231_v1 = vadd.f32 1e-05, %v1214_v25 }
 0x23e   : > { %v1367_v0 = vmul.f32 %v2821_v34, %v1366_v32  ;;  %v1373_v55 = vmul.f32 %v2823_v48, %v3903_v61  ;;  %v1523_v12 = vadd.f32 %v3698_v5, %v1485_v9  ;;  %v1524_v2 = vadd.f32 %v3700_v17, %v1486_v40 }
 0x23f   : > { %2824 = vrsqrt.f32 %v1231_v1  ;;  %vm1379_vm11 = vweird.f32 %v2823_v48  ;;  %v1458_v61 = vsub.f32 %v3629_v45, %v3892_v18  ;;  %vm1388_vm15 = vweird.f32 %v1231_v1 }
 0x240   : > { %v1374_v26 = vmul.f32 %v2823_v48, %v1373_v55  ;;  %v1371_v57 = vsel %vm1370_vm10, %v2821_v34, %v1367_v0  ;;  %v1555_v20 = vmax.f32 %v1523_v12, 0.0  ;;  %v1556_v60 = vmax.f32 %v1524_v2, 0.0  ;;  %vm1380_vm13 = vmor %vm1378_vm12, %vm1379_vm11 }
 0x241   : > { %v1423_v43 = vmul.f32 %v3680_v19, %v1371_v57  ;;  %v1424_v42 = vmul.f32 %v3685_v46, %v1371_v57 }
 0x242   : > { %v1375_v53 = vmul.f32 0.5, %v1374_v26 }
 0x243   : > { %v1487_v4 = vmul.f32 %v1455_v47, %v1423_v43  ;;  %v1488_v59 = vmul.f32 %v1456_v54, %v1424_v42 }
 0x244   : > { %v1376_v6 = vsub.f32 1.5, %v1375_v53 }
 0x245   : > { %v1525_v8 = vadd.f32 %v3698_v5, %v1487_v4  ;;  %v1526_v23 = vadd.f32 %v3700_v17, %v1488_v59  ;;  %v2825_v14 = vpop.eup %2824 }
 0x246   : > { %v1377_v13 = vmul.f32 %v2823_v48, %v1376_v6  ;;  %v1383_v38 = vmul.f32 %v2825_v14, %v1231_v1  ;;  %vm1389_vm14 = vweird.f32 %v2825_v14 }
 0x247   : > { %v1557_v49 = vmax.f32 %v1525_v8, 0.0  ;;  %v1558_v22 = vmax.f32 %v1526_v23, 0.0  ;;  %vm1390_vm0 = vmor %vm1388_vm15, %vm1389_vm14  ;;  %v462_v8 = vld [vmem:[%s3363_s17] sm:$0xff]  }
 0x248   : > { %v1384_v39 = vmul.f32 %v2825_v14, %v1383_v38  ;;  %v1381_v44 = vsel %vm1380_vm13, %v2823_v48, %v1377_v13 }
 0x249   : > { %v1575_v34 = vpack.c.bf16 %v1557_v49, %v1555_v20  ;;  %v1576_v52 = vpack.c.bf16 %v1558_v22, %v1556_v60  ;;  %v1425_v62 = vmul.f32 %v3680_v19, %v1381_v44  ;;  %v1426_v35 = vmul.f32 %v3685_v46, %v1381_v44 }
 0x24a   : > { %v1385_v29 = vmul.f32 0.5, %v1384_v39  ;;  %v2113_v60 = vunpack.c.l.bf16 %v462_v8 }
 0x24b   : > { %1749 = vmatmul.bf16.gmra.mxu0 %v1575_v34  ;;  %1798 = vmatmul.bf16.gmra.mxu1 %v1576_v52  ;;  %v1489_v7 = vmul.f32 %v1457_v37, %v1425_v62  ;;  %v1490_v41 = vmul.f32 %v1458_v61, %v1426_v35 }
 0x24c   : > { %v1386_v15 = vsub.f32 1.5, %v1385_v29 }
 0x24d   : > { %v1527_v58 = vadd.f32 %v3698_v5, %v1489_v7  ;;  %v1528_v18 = vadd.f32 %v3700_v17, %v1490_v41 }
 0x24e   : > { %v1387_v16 = vmul.f32 %v2825_v14, %v1386_v15 }
 0x24f   : > { %v1559_v10 = vmax.f32 %v1527_v58, 0.0  ;;  %v1560_v56 = vmax.f32 %v1528_v18, 0.0 }
 0x250   : > { %v1391_v50 = vsel %vm1390_vm0, %v2825_v14, %v1387_v16 }
 0x251   : > { %v1427_v27 = vmul.f32 %v3680_v19, %v1391_v50  ;;  %v1428_v24 = vmul.f32 %v3685_v46, %v1391_v50  ;;  %v3956_v19 = vld [vmem:[%s4042_s8] ss:$0 sm:$0xff] }
 0x253   : > { %v1491_v30 = vmul.f32 %v1459_v51, %v1427_v27  ;;  %v1492_v45 = vmul.f32 %v1460_v33, %v1428_v24 }
 0x255   : > { %v1529_v3 = vadd.f32 %v3698_v5, %v1491_v30  ;;  %v1530_v21 = vadd.f32 %v3700_v17, %v1492_v45  ;;  %v2114_v30 = vunpack.c.h.bf16 %v462_v8 }
 0x257   : > { %v1561_v32 = vmax.f32 %v1529_v3, 0.0  ;;  %v1562_v36 = vmax.f32 %v1530_v21, 0.0 }
 0x259   : > { %v1577_v48 = vpack.c.bf16 %v1561_v32, %v1559_v10  ;;  %v1578_v63 = vpack.c.bf16 %v1562_v36, %v1560_v56 }
 0x25b   : > { %1754 = vmatmul.bf16.gmra.mxu0 %v1577_v48  ;;  %1803 = vmatmul.bf16.gmra.mxu1 %v1578_v63 }
 0x268   : > { %v1720_v46 = vpop.f32.mrf.mxu0  ;;  %v1769_v31 = vpop.f32.mrf.mxu1 }
 0x269   : > { %v1721_v28 = vadd.f32 %v3956_v19, %v1720_v46  ;;  %v464_v46 = vld [vmem:[%s3363_s17 + $0x8] sm:$0xff]  }
 0x26b   : > { %v1770_v5 = vadd.f32 %v1769_v31, %v1721_v28 }
 0x26d   : > { %v2588_v25 = vmul.f32 -1.442695, %v1770_v5 }
 0x26f   : > { %2826 = vpow2.f32 %v2588_v25 }
 0x270   : > { %v1722_v17 = vpop.f32.mrf.mxu0  ;;  %v1771_v0 = vpop.f32.mrf.mxu1 }
 0x271   : > { %v1723_v11 = vadd.f32 %v3956_v19, %v1722_v17 }
 0x273   : > { %v1772_v55 = vadd.f32 %v1771_v0, %v1723_v11 }
 0x275   : > { %v2827_v1 = vpop.eup %2826  ;;  %v2589_v9 = vmul.f32 -1.442695, %v1772_v55  ;;  %v2115_v55 = vunpack.c.l.bf16 %v464_v46 }
 0x276   : > { %v1857_v47 = vadd.f32 1.0, %v2827_v1 }
 0x277   : > { %2828 = vpow2.f32 %v2589_v9 }
 0x278   : > { %2830 = vrcp.f32 %v1857_v47  ;;  %v1725_v26 = vpop.f32.mrf.mxu0  ;;  %v1774_v40 = vpop.f32.mrf.mxu1  ;;  %v1884_v23 = vand.u32 2147483648, %v1857_v47  ;;  %v1882_v20 = vand.u32 2147483647, %v1857_v47  ;;  %vm1878_vm2 = vweird.f32 %v1857_v47 }
 0x279   : > { %v1726_v57 = vadd.f32 %v3956_v19, %v1725_v26 }
 0x27a   : > { %v1885_v52 = vor.u32 1.1754944e-38, %v1884_v23  ;;  %vm1883_vm4 = vcmp.eq.f32.partialorder %v1882_v20, 8.507059e+37 }
 0x27b   : > { %v1775_v54 = vadd.f32 %v1774_v40, %v1726_v57 }
 0x27d   : > { %v2829_v43 = vpop.eup %2828  ;;  %v2590_v42 = vmul.f32 -1.442695, %v1775_v54 }
 0x27e   : > { %v2831_v53 = vpop.eup %2830  ;;  %v1858_v4 = vadd.f32 1.0, %v2829_v43 }
 0x27f   : > { %v1874_v12 = vmul.f32 %v2831_v53, %v1857_v47  ;;  %2832 = vpow2.f32 %v2590_v42  ;;  %vm1879_vm1 = vweird.f32 %v2831_v53 }
 0x280   : > { %2834 = vrcp.f32 %v1858_v4  ;;  %v1727_v59 = vpop.f32.mrf.mxu0  ;;  %v1776_v13 = vpop.f32.mrf.mxu1  ;;  %vm1880_vm3 = vmor %vm1878_vm2, %vm1879_vm1  ;;  %v1899_v7 = vand.u32 2147483648, %v1858_v4  ;;  %v1897_v51 = vand.u32 2147483647, %v1858_v4  ;;  %vm1893_vm6 = vweird.f32 %v1858_v4 }
 0x281   : > { %v1875_v6 = vsub.f32 1.0, %v1874_v12  ;;  %v1728_v2 = vadd.f32 %v3956_v19, %v1727_v59 }
 0x282   : > { %v1900_v18 = vor.u32 1.1754944e-38, %v1899_v7  ;;  %vm1898_vm8 = vcmp.eq.f32.partialorder %v1897_v51, 8.507059e+37 }
 0x283   : > { %v1876_v14 = vmul.f32 %v2831_v53, %v1875_v6  ;;  %v1777_v49 = vadd.f32 %v1776_v13, %v1728_v2 }
 0x285   : > { %v2833_v22 = vpop.eup %2832  ;;  %v1877_v38 = vadd.f32 %v2831_v53, %v1876_v14  ;;  %v2591_v34 = vmul.f32 -1.442695, %v1777_v49  ;;  %v2116_v14 = vunpack.c.h.bf16 %v464_v46 }
 0x286   : > { %v2835_v39 = vpop.eup %2834  ;;  %v1859_v44 = vadd.f32 1.0, %v2833_v22 }
 0x287   : > { %v1881_v29 = vsel %vm1880_vm3, %v2831_v53, %v1877_v38  ;;  %v1889_v62 = vmul.f32 %v2835_v39, %v1858_v4  ;;  %2836 = vpow2.f32 %v2591_v34  ;;  %vm1894_vm5 = vweird.f32 %v2835_v39 }
 0x288   : > { %v1886_v35 = vsel %vm1883_vm4, %v1885_v52, %v1881_v29  ;;  %2838 = vrcp.f32 %v1859_v44  ;;  %v1730_v15 = vpop.f32.mrf.mxu0  ;;  %v1779_v41 = vpop.f32.mrf.mxu1  ;;  %vm1895_vm7 = vmor %vm1893_vm6, %vm1894_vm5  ;;  %v1914_v28 = vand.u32 2147483648, %v1859_v44  ;;  %v1912_v25 = vand.u32 2147483647, %v1859_v44 }
 0x289   : > { %v2129_v37 = vmul.f32 %v2113_v60, %v1886_v35  ;;  %v1890_v61 = vsub.f32 1.0, %v1889_v62  ;;  %v1731_v16 = vadd.f32 %v3956_v19, %v1730_v15  ;;  %vm1908_vm10 = vweird.f32 %v1859_v44  ;;  %v466_v35 = vld [vmem:[%s3363_s17 + $0x10] sm:$0xff]  }
 0x28a   : > { %v1915_v47 = vor.u32 1.1754944e-38, %v1914_v28  ;;  %vm1913_vm12 = vcmp.eq.f32.partialorder %v1912_v25, 8.507059e+37  ;;  %v2117_v51 = vunpack.c.l.bf16 %v466_v35 }
 0x28b   : > { %2145 = vst [vmem:[%s3965_s3] sm:$0xff] %v2129_v37  ;;  %v1891_v50 = vmul.f32 %v2835_v39, %v1890_v61  ;;  %v1780_v33 = vadd.f32 %v1779_v41, %v1731_v16 }
 0x28d   : > { %v2837_v27 = vpop.eup %2836  ;;  %v1892_v24 = vadd.f32 %v2835_v39, %v1891_v50  ;;  %v2592_v58 = vmul.f32 -1.442695, %v1780_v33 }
 0x28e   : > { %v2839_v45 = vpop.eup %2838  ;;  %v1860_v3 = vadd.f32 1.0, %v2837_v27 }
 0x28f   : > { %v1896_v21 = vsel %vm1895_vm7, %v2835_v39, %v1892_v24  ;;  %v1904_v10 = vmul.f32 %v2839_v45, %v1859_v44  ;;  %2840 = vpow2.f32 %v2592_v58  ;;  %vm1909_vm9 = vweird.f32 %v2839_v45 }
 0x290   : > { %v1901_v32 = vsel %vm1898_vm8, %v1900_v18, %v1896_v21  ;;  %2842 = vrcp.f32 %v1860_v3  ;;  %v1732_v56 = vpop.f32.mrf.mxu0  ;;  %v1781_v31 = vpop.f32.mrf.mxu1  ;;  %vm1910_vm11 = vmor %vm1908_vm10, %vm1909_vm9  ;;  %v1929_v12 = vand.u32 2147483648, %v1860_v3  ;;  %v1927_v2 = vand.u32 2147483647, %v1860_v3 }
 0x291   : > { %v2130_v36 = vmul.f32 %v2114_v30, %v1901_v32  ;;  %v1905_v48 = vsub.f32 1.0, %v1904_v10  ;;  %v1733_v63 = vadd.f32 %v3956_v19, %v1732_v56  ;;  %vm1923_vm14 = vweird.f32 %v1860_v3 }
 0x292   : > { %v1930_v22 = vor.u32 1.1754944e-38, %v1929_v12  ;;  %vm1928_vm0 = vcmp.eq.f32.partialorder %v1927_v2, 8.507059e+37 }
 0x293   : > { %2146 = vst [vmem:[%s3965_s3 + $0x8] sm:$0xff] %v2130_v36  ;;  %v1906_v5 = vmul.f32 %v2839_v45, %v1905_v48  ;;  %v1782_v17 = vadd.f32 %v1781_v31, %v1733_v63 }
 0x295   : > { %v2841_v11 = vpop.eup %2840  ;;  %v1907_v0 = vadd.f32 %v2839_v45, %v1906_v5  ;;  %v2593_v1 = vmul.f32 -1.442695, %v1782_v17  ;;  %v2118_v5 = vunpack.c.h.bf16 %v466_v35 }
 0x296   : > { %v2843_v9 = vpop.eup %2842  ;;  %v1861_v26 = vadd.f32 1.0, %v2841_v11 }
 0x297   : > { %v1911_v57 = vsel %vm1910_vm11, %v2839_v45, %v1907_v0  ;;  %v1919_v40 = vmul.f32 %v2843_v9, %v1860_v3  ;;  %2844 = vpow2.f32 %v2593_v1  ;;  %vm1924_vm13 = vweird.f32 %v2843_v9 }
 0x298   : > { %v1916_v54 = vsel %vm1913_vm12, %v1915_v47, %v1911_v57  ;;  %2846 = vrcp.f32 %v1861_v26  ;;  %v1735_v43 = vpop.f32.mrf.mxu0  ;;  %v1784_v59 = vpop.f32.mrf.mxu1  ;;  %vm1925_vm15 = vmor %vm1923_vm14, %vm1924_vm13  ;;  %v1944_v15 = vand.u32 2147483648, %v1861_v26  ;;  %v1942_v16 = vand.u32 2147483647, %v1861_v26 }
 0x299   : > { %v2131_v42 = vmul.f32 %v2115_v55, %v1916_v54  ;;  %v1920_v53 = vsub.f32 1.0, %v1919_v40  ;;  %v1736_v4 = vadd.f32 %v3956_v19, %v1735_v43  ;;  %vm1938_vm2 = vweird.f32 %v1861_v26  ;;  %v468_v54 = vld [vmem:[%s3363_s17 + $0x18] sm:$0xff]  }
 0x29a   : > { %v1945_v24 = vor.u32 1.1754944e-38, %v1944_v15  ;;  %vm1943_vm4 = vcmp.eq.f32.partialorder %v1942_v16, 8.507059e+37  ;;  %v2119_v2 = vunpack.c.l.bf16 %v468_v54 }
 0x29b   : > { %2147 = vst [vmem:[%s3965_s3 + $0x10] sm:$0xff] %v2131_v42  ;;  %v1921_v6 = vmul.f32 %v2843_v9, %v1920_v53  ;;  %v1785_v8 = vadd.f32 %v1784_v59, %v1736_v4 }
 0x29d   : > { %v2845_v23 = vpop.eup %2844  ;;  %v1922_v13 = vadd.f32 %v2843_v9, %v1921_v6  ;;  %v2594_v20 = vmul.f32 -1.442695, %v1785_v8 }
 0x29e   : > { %v2847_v49 = vpop.eup %2846  ;;  %v1862_v38 = vadd.f32 1.0, %v2845_v23 }
 0x29f   : > { %v1926_v60 = vsel %vm1925_vm15, %v2843_v9, %v1922_v13  ;;  %v1934_v34 = vmul.f32 %v2847_v49, %v1861_v26  ;;  %2848 = vpow2.f32 %v2594_v20  ;;  %vm1939_vm1 = vweird.f32 %v2847_v49 }
 0x2a0   : > { %v1931_v39 = vsel %vm1928_vm0, %v1930_v22, %v1926_v60  ;;  %2850 = vrcp.f32 %v1862_v38  ;;  %v1737_v52 = vpop.f32.mrf.mxu0  ;;  %v1786_v37 = vpop.f32.mrf.mxu1  ;;  %vm1940_vm3 = vmor %vm1938_vm2, %vm1939_vm1  ;;  %v1959_v56 = vand.u32 2147483648, %v1862_v38  ;;  %v1957_v63 = vand.u32 2147483647, %v1862_v38 }
 0x2a1   : > { %v2132_v44 = vmul.f32 %v2116_v14, %v1931_v39  ;;  %v1935_v29 = vsub.f32 1.0, %v1934_v34  ;;  %v1738_v62 = vadd.f32 %v3956_v19, %v1737_v52  ;;  %vm1953_vm6 = vweird.f32 %v1862_v38 }
 0x2a2   : > { %v1960_v11 = vor.u32 1.1754944e-38, %v1959_v56  ;;  %vm1958_vm8 = vcmp.eq.f32.partialorder %v1957_v63, 8.507059e+37 }
 0x2a3   : > { %2148 = vst [vmem:[%s3965_s3 + $0x18] sm:$0xff] %v2132_v44  ;;  %v1936_v61 = vmul.f32 %v2847_v49, %v1935_v29  ;;  %v1787_v7 = vadd.f32 %v1786_v37, %v1738_v62 }
 0x2a5   : > { %v2849_v41 = vpop.eup %2848  ;;  %v1937_v50 = vadd.f32 %v2847_v49, %v1936_v61  ;;  %v2595_v33 = vmul.f32 -1.442695, %v1787_v7  ;;  %v2120_v61 = vunpack.c.h.bf16 %v468_v54 }
 0x2a6   : > { %v2851_v27 = vpop.eup %2850  ;;  %v1863_v30 = vadd.f32 1.0, %v2849_v41 }
 0x2a7   : > { %v1941_v58 = vsel %vm1940_vm3, %v2847_v49, %v1937_v50  ;;  %v1949_v45 = vmul.f32 %v2851_v27, %v1862_v38  ;;  %2852 = vpow2.f32 %v2595_v33  ;;  %vm1954_vm5 = vweird.f32 %v2851_v27 }
 0x2a8   : > { %v1946_v18 = vsel %vm1943_vm4, %v1945_v24, %v1941_v58  ;;  %2854 = vrcp.f32 %v1863_v30  ;;  %v1740_v3 = vpop.f32.mrf.mxu0  ;;  %v1789_v36 = vpop.f32.mrf.mxu1  ;;  %vm1955_vm7 = vmor %vm1953_vm6, %vm1954_vm5  ;;  %v1974_v43 = vand.u32 2147483648, %v1863_v30  ;;  %v1972_v4 = vand.u32 2147483647, %v1863_v30 }
 0x2a9   : > { %v2133_v21 = vmul.f32 %v2117_v51, %v1946_v18  ;;  %v1950_v10 = vsub.f32 1.0, %v1949_v45  ;;  %v1741_v32 = vadd.f32 %v3956_v19, %v1740_v3  ;;  %vm1968_vm10 = vweird.f32 %v1863_v30  ;;  %v470_v45 = vld [vmem:[%s3363_s17 + $0x20] sm:$0xff]  }
 0x2aa   : > { %v1975_v13 = vor.u32 1.1754944e-38, %v1974_v43  ;;  %vm1973_vm12 = vcmp.eq.f32.partialorder %v1972_v4, 8.507059e+37  ;;  %v2122_v43 = vunpack.c.h.bf16 %v470_v45 }
 0x2ab   : > { %2149 = vst [vmem:[%s3965_s3 + $0x20] sm:$0xff] %v2133_v21  ;;  %v1951_v48 = vmul.f32 %v2851_v27, %v1950_v10  ;;  %v1790_v46 = vadd.f32 %v1789_v36, %v1741_v32 }
 0x2ad   : > { %v2853_v28 = vpop.eup %2852  ;;  %v1952_v31 = vadd.f32 %v2851_v27, %v1951_v48  ;;  %v2596_v25 = vmul.f32 -1.442695, %v1790_v46  ;;  %v2121_v48 = vunpack.c.l.bf16 %v470_v45 }
 0x2ae   : > { %v2855_v17 = vpop.eup %2854  ;;  %v1864_v0 = vadd.f32 1.0, %v2853_v28 }
 0x2af   : > { %v1956_v55 = vsel %vm1955_vm7, %v2851_v27, %v1952_v31  ;;  %v1964_v1 = vmul.f32 %v2855_v17, %v1863_v30  ;;  %2856 = vpow2.f32 %v2596_v25  ;;  %vm1969_vm9 = vweird.f32 %v2855_v17 }
 0x2b0   : > { %v1961_v9 = vsel %vm1958_vm8, %v1960_v11, %v1956_v55  ;;  %2858 = vrcp.f32 %v1864_v0  ;;  %v1742_v47 = vpop.f32.mrf.mxu0  ;;  %v1791_v42 = vpop.f32.mrf.mxu1  ;;  %vm1970_vm11 = vmor %vm1968_vm10, %vm1969_vm9  ;;  %v1989_v39 = vand.u32 2147483648, %v1864_v0  ;;  %v1987_v62 = vand.u32 2147483647, %v1864_v0 }
 0x2b1   : > { %v2134_v26 = vmul.f32 %v2118_v5, %v1961_v9  ;;  %v1965_v57 = vsub.f32 1.0, %v1964_v1  ;;  %v1743_v40 = vadd.f32 %v3956_v19, %v1742_v47  ;;  %vm1983_vm14 = vweird.f32 %v1864_v0 }
 0x2b2   : > { %v1990_v7 = vor.u32 1.1754944e-38, %v1989_v39  ;;  %vm1988_vm0 = vcmp.eq.f32.partialorder %v1987_v62, 8.507059e+37 }
 0x2b3   : > { %2150 = vst [vmem:[%s3965_s3 + $0x28] sm:$0xff] %v2134_v26  ;;  %v1966_v53 = vmul.f32 %v2855_v17, %v1965_v57  ;;  %v1792_v12 = vadd.f32 %v1791_v42, %v1743_v40 }
 0x2b5   : > { %v2857_v59 = vpop.eup %2856  ;;  %v1967_v6 = vadd.f32 %v2855_v17, %v1966_v53  ;;  %v2597_v8 = vmul.f32 -1.442695, %v1792_v12 }
 0x2b6   : > { %v2859_v23 = vpop.eup %2858  ;;  %v1865_v14 = vadd.f32 1.0, %v2857_v59 }
 0x2b7   : > { %v1971_v20 = vsel %vm1970_vm11, %v2855_v17, %v1967_v6  ;;  %v1979_v49 = vmul.f32 %v2859_v23, %v1864_v0  ;;  %2860 = vpow2.f32 %v2597_v8  ;;  %vm1984_vm13 = vweird.f32 %v2859_v23 }
 0x2b8   : > { %v1976_v22 = vsel %vm1973_vm12, %v1975_v13, %v1971_v20  ;;  %2862 = vrcp.f32 %v1865_v14  ;;  %v1745_v34 = vpop.f32.mrf.mxu0  ;;  %v1794_v44 = vpop.f32.mrf.mxu1  ;;  %vm1985_vm15 = vmor %vm1983_vm14, %vm1984_vm13  ;;  %v2004_v18 = vand.u32 2147483648, %v1865_v14  ;;  %v2002_v32 = vand.u32 2147483647, %v1865_v14 }
 0x2b9   : > { %v2135_v38 = vmul.f32 %v2119_v2, %v1976_v22  ;;  %v1980_v60 = vsub.f32 1.0, %v1979_v49  ;;  %v1746_v52 = vadd.f32 %v3956_v19, %v1745_v34  ;;  %vm1998_vm2 = vweird.f32 %v1865_v14 }
 0x2ba   : > { %v2005_v46 = vor.u32 1.1754944e-38, %v2004_v18  ;;  %vm2003_vm4 = vcmp.eq.f32.partialorder %v2002_v32, 8.507059e+37 }
 0x2bb   : > { %2151 = vst [vmem:[%s3965_s3 + $0x30] sm:$0xff] %v2135_v38  ;;  %v1981_v29 = vmul.f32 %v2859_v23, %v1980_v60  ;;  %v1795_v35 = vadd.f32 %v1794_v44, %v1746_v52  ;;  %v472_v38 = vld [vmem:[%s3363_s17 + $0x28] sm:$0xff]  }
 0x2bc   : > { %v2123_v62 = vunpack.c.l.bf16 %v472_v38 }
 0x2bd   : > { %v2861_v15 = vpop.eup %2860  ;;  %v1982_v37 = vadd.f32 %v2859_v23, %v1981_v29  ;;  %v2598_v50 = vmul.f32 -1.442695, %v1795_v35 }
 0x2be   : > { %v2863_v16 = vpop.eup %2862  ;;  %v1866_v41 = vadd.f32 1.0, %v2861_v15 }
 0x2bf   : > { %v1986_v51 = vsel %vm1985_vm15, %v2859_v23, %v1982_v37  ;;  %v1994_v33 = vmul.f32 %v2863_v16, %v1865_v14  ;;  %vm1999_vm1 = vweird.f32 %v2863_v16 }
 0x2c0   : > { %v1991_v27 = vsel %vm1988_vm0, %v1990_v7, %v1986_v51  ;;  %2864 = vrcp.f32 %v1866_v41  ;;  %v1747_v58 = vpop.f32.mrf.mxu0  ;;  %v1796_v21 = vpop.f32.mrf.mxu1  ;;  %vm2000_vm3 = vmor %vm1998_vm2, %vm1999_vm1  ;;  %v2019_v9 = vand.u32 2147483648, %v1866_v41  ;;  %v2017_v57 = vand.u32 2147483647, %v1866_v41 }
 0x2c1   : > { %v2136_v24 = vmul.f32 %v2120_v61, %v1991_v27  ;;  %v1995_v30 = vsub.f32 1.0, %v1994_v33  ;;  %2866 = vpow2.f32 %v2598_v50  ;;  %v1748_v3 = vadd.f32 %v3956_v19, %v1747_v58 }
 0x2c2   : > { %vm2013_vm6 = vweird.f32 %v1866_v41  ;;  %v2020_v4 = vor.u32 1.1754944e-38, %v2019_v9  ;;  %vm2018_vm8 = vcmp.eq.f32.partialorder %v2017_v57, 8.507059e+37 }
 0x2c3   : > { %2152 = vst [vmem:[%s3965_s3 + $0x38] sm:$0xff] %v2136_v24  ;;  %v1996_v10 = vmul.f32 %v2863_v16, %v1995_v30  ;;  %v1797_v56 = vadd.f32 %v1796_v21, %v1748_v3  ;;  %v2124_v21 = vunpack.c.h.bf16 %v472_v38 }
 0x2c5   : > { %v1997_v36 = vadd.f32 %v2863_v16, %v1996_v10  ;;  %v2599_v28 = vmul.f32 -1.442695, %v1797_v56 }
 0x2c6   : > { %v2865_v63 = vpop.eup %2864 }
 0x2c7   : > { %v2867_v31 = vpop.eup %2866  ;;  %v2001_v5 = vsel %vm2000_vm3, %v2863_v16, %v1997_v36  ;;  %v2009_v25 = vmul.f32 %v2865_v63, %v1866_v41  ;;  %2868 = vpow2.f32 %v2599_v28  ;;  %vm2014_vm5 = vweird.f32 %v2865_v63 }
 0x2c8   : > { %v2006_v17 = vsel %vm2003_vm4, %v2005_v46, %v2001_v5  ;;  %v1867_v11 = vadd.f32 1.0, %v2867_v31  ;;  %v1750_v1 = vpop.f32.mrf.mxu0  ;;  %v1799_v47 = vpop.f32.mrf.mxu1  ;;  %vm2015_vm7 = vmor %vm2013_vm6, %vm2014_vm5 }
 0x2c9   : > { %v2137_v0 = vmul.f32 %v2121_v48, %v2006_v17  ;;  %v2010_v55 = vsub.f32 1.0, %v2009_v25  ;;  %v1751_v40 = vadd.f32 %v3956_v19, %v1750_v1 }
 0x2ca   : > { %2870 = vrcp.f32 %v1867_v11  ;;  %v2034_v60 = vand.u32 2147483648, %v1867_v11  ;;  %v2032_v39 = vand.u32 2147483647, %v1867_v11  ;;  %vm2028_vm10 = vweird.f32 %v1867_v11 }
 0x2cb   : > { %2153 = vst [vmem:[%s3965_s3 + $0x40] sm:$0xff] %v2137_v0  ;;  %v2011_v26 = vmul.f32 %v2865_v63, %v2010_v55  ;;  %v1800_v42 = vadd.f32 %v1799_v47, %v1751_v40  ;;  %v474_v0 = vld [vmem:[%s3363_s17 + $0x30] sm:$0xff]  }
 0x2cc   : > { %v2035_v37 = vor.u32 1.1754944e-38, %v2034_v60  ;;  %vm2033_vm12 = vcmp.eq.f32.partialorder %v2032_v39, 8.507059e+37 }
 0x2cd   : > { %v2012_v54 = vadd.f32 %v2865_v63, %v2011_v26  ;;  %v2869_v53 = vpop.eup %2868  ;;  %v2600_v6 = vmul.f32 -1.442695, %v1800_v42  ;;  %v2125_v42 = vunpack.c.l.bf16 %v474_v0 }
 0x2ce   : > { %v1868_v59 = vadd.f32 1.0, %v2869_v53 }
 0x2cf   : > { %v2016_v12 = vsel %vm2015_vm7, %v2865_v63, %v2012_v54 }
 0x2d0   : > { %v2871_v2 = vpop.eup %2870  ;;  %v2021_v8 = vsel %vm2018_vm8, %v2020_v4, %v2016_v12  ;;  %2872 = vrcp.f32 %v1868_v59  ;;  %v1752_v14 = vpop.f32.mrf.mxu0  ;;  %v2049_v30 = vand.u32 2147483648, %v1868_v59  ;;  %v2047_v45 = vand.u32 2147483647, %v1868_v59 }
 0x2d1   : > { %v2138_v23 = vmul.f32 %v2122_v43, %v2021_v8  ;;  %v2024_v13 = vmul.f32 %v2871_v2, %v1867_v11  ;;  %2874 = vpow2.f32 %v2600_v6  ;;  %v1801_v20 = vpop.f32.mrf.mxu1  ;;  %v1753_v22 = vadd.f32 %v3956_v19, %v1752_v14 }
 0x2d2   : > { %vm2029_vm9 = vweird.f32 %v2871_v2  ;;  %vm2043_vm14 = vweird.f32 %v1868_v59  ;;  %v2050_v56 = vor.u32 1.1754944e-38, %v2049_v30  ;;  %vm2048_vm0 = vcmp.eq.f32.partialorder %v2047_v45, 8.507059e+37 }
 0x2d3   : > { %2154 = vst [vmem:[%s3965_s3 + $0x48] sm:$0xff] %v2138_v23  ;;  %v2025_v49 = vsub.f32 1.0, %v2024_v13  ;;  %v1802_v52 = vadd.f32 %v1801_v20, %v1753_v22  ;;  %vm2030_vm11 = vmor %vm2028_vm10, %vm2029_vm9  ;;  %v2126_v20 = vunpack.c.h.bf16 %v474_v0 }
 0x2d5   : > { %v2026_v34 = vmul.f32 %v2871_v2, %v2025_v49  ;;  %v2601_v35 = vmul.f32 -1.442695, %v1802_v52 }
 0x2d6   : > { %v2873_v44 = vpop.eup %2872 }
 0x2d7   : > { %v2027_v29 = vadd.f32 %v2871_v2, %v2026_v34  ;;  %v2875_v15 = vpop.eup %2874  ;;  %v2039_v61 = vmul.f32 %v2873_v44, %v1868_v59  ;;  %2876 = vpow2.f32 %v2601_v35  ;;  %vm2044_vm13 = vweird.f32 %v2873_v44 }
 0x2d8   : > { %v1869_v7 = vadd.f32 1.0, %v2875_v15  ;;  %v1755_v41 = vpop.f32.mrf.mxu0  ;;  %vm2045_vm15 = vmor %vm2043_vm14, %vm2044_vm13 }
 0x2d9   : > { %v2031_v16 = vsel %vm2030_vm11, %v2871_v2, %v2027_v29  ;;  %v2040_v51 = vsub.f32 1.0, %v2039_v61  ;;  %v1756_v33 = vadd.f32 %v3956_v19, %v1755_v41  ;;  %v1804_v27 = vpop.f32.mrf.mxu1  ;;  %v476_v29 = vld [vmem:[%s3363_s17 + $0x38] sm:$0xff]   ;;  %s3086_s17 = scalar_lea.hbm %s3085_s0, 128 }
 0x2da   : > { %v2036_v50 = vsel %vm2033_vm12, %v2035_v37, %v2031_v16  ;;  %2878 = vrcp.f32 %v1869_v7  ;;  %v2064_v55 = vand.u32 2147483648, %v1869_v7  ;;  %v2062_v26 = vand.u32 2147483647, %v1869_v7  ;;  %p3087_p1 = scmp.ne.s32.totalorder %s3085_s0, %s3086_s17  ;;  %p3092_p9 = scmp.lt.s32.totalorder %s3090_s27, %s3086_s17 }
 0x2db   : > { %v2139_v24 = vmul.f32 %v2123_v62, %v2036_v50  ;;  %v2041_v58 = vmul.f32 %v2873_v44, %v2040_v51  ;;  %v1805_v18 = vadd.f32 %v1804_v27, %v1756_v33  ;;  %vm2058_vm2 = vweird.f32 %v1869_v7 }
 0x2dc   : > { %v2065_v53 = vor.u32 1.1754944e-38, %v2064_v55  ;;  %vm2063_vm4 = vcmp.eq.f32.partialorder %v2062_v26, 8.507059e+37  ;;  %v2127_v61 = vunpack.c.l.bf16 %v476_v29  ;;  %p3088_p4 = pnand %p3087_p1, %p3304_p3  ;;  %p3093_p2 = por %p3092_p9, %p3091_p7 }
 0x2dd   : > { %2155 = vst [vmem:[%s3965_s3 + $0x50] sm:$0xff] %v2139_v24  ;;  %v2042_v3 = vadd.f32 %v2873_v44, %v2041_v58  ;;  %v2602_v10 = vmul.f32 -1.442695, %v1805_v18  ;;  %v2877_v32 = vpop.eup %2876  ;;  %v2128_v18 = vunpack.c.h.bf16 %v476_v29 }
 0x2de   : > { %v1870_v48 = vadd.f32 1.0, %v2877_v32  ;;  %p3089_p8 = pneg %p3088_p4 }
 0x2df   : > { %v2046_v36 = vsel %vm2045_vm15, %v2873_v44, %v2042_v3  ;;  %2880 = vpow2.f32 %v2602_v10 }
 0x2e0   : > { %v2879_v63 = vpop.eup %2878  ;;  %v2051_v46 = vsel %vm2048_vm0, %v2050_v56, %v2046_v36  ;;  %v1757_v28 = vpop.f32.mrf.mxu0  ;;  %2882 = vrcp.f32 %v1870_v48  ;;  %v2079_v2 = vand.u32 2147483648, %v1870_v48  ;;  %v2077_v23 = vand.u32 2147483647, %v1870_v48  ;;  %p3094_p10 = pnand %p3093_p2, %p3089_p8 }
 0x2e1   : > { %v2140_v31 = vmul.f32 %v2124_v21, %v2051_v46  ;;  %v2054_v5 = vmul.f32 %v2879_v63, %v1869_v7  ;;  %v1758_v25 = vadd.f32 %v3956_v19, %v1757_v28  ;;  %v1806_v11 = vpop.f32.mrf.mxu1  ;;  %vm2059_vm1 = vweird.f32 %v2879_v63 }
 0x2e2   : > { %vm2060_vm3 = vmor %vm2058_vm2, %vm2059_vm1  ;;  %vm2073_vm6 = vweird.f32 %v1870_v48  ;;  %v2080_v22 = vor.u32 1.1754944e-38, %v2079_v2  ;;  %vm2078_vm8 = vcmp.eq.f32.partialorder %v2077_v23, 8.507059e+37 }
 0x2e3   : > { %2156 = vst [vmem:[%s3965_s3 + $0x58] sm:$0xff] %v2140_v31  ;;  %v2055_v17 = vsub.f32 1.0, %v2054_v5  ;;  %v1807_v1 = vadd.f32 %v1806_v11, %v1758_v25 }
 0x2e5   : > { %v2881_v9 = vpop.eup %2880  ;;  %v2056_v47 = vmul.f32 %v2879_v63, %v2055_v17  ;;  %v2603_v40 = vmul.f32 -1.442695, %v1807_v1 }
 0x2e6   : > { %v1871_v57 = vadd.f32 1.0, %v2881_v9  ;;  %v2883_v54 = vpop.eup %2882 }
 0x2e7   : > { %v2057_v43 = vadd.f32 %v2879_v63, %v2056_v47  ;;  %v2069_v19 = vmul.f32 %v2883_v54, %v1870_v48  ;;  %vm2074_vm5 = vweird.f32 %v2883_v54 }
 0x2e8   : > { %2884 = vrcp.f32 %v1871_v57  ;;  %vm2075_vm7 = vmor %vm2073_vm6, %vm2074_vm5  ;;  %v2094_v62 = vand.u32 2147483648, %v1871_v57  ;;  %v2092_v15 = vand.u32 2147483647, %v1871_v57  ;;  %vm2088_vm10 = vweird.f32 %v1871_v57 }
 0x2e9   : > { %v2061_v4 = vsel %vm2060_vm3, %v2879_v63, %v2057_v43  ;;  %2886 = vpow2.f32 %v2603_v40  ;;  %v2070_v59 = vsub.f32 1.0, %v2069_v19 }
 0x2ea   : > { %v2066_v12 = vsel %vm2063_vm4, %v2065_v53, %v2061_v4  ;;  %v2095_v16 = vor.u32 1.1754944e-38, %v2094_v62  ;;  %vm2093_vm12 = vcmp.eq.f32.partialorder %v2092_v15, 8.507059e+37 }
 0x2eb   : > { %v2141_v6 = vmul.f32 %v2125_v42, %v2066_v12  ;;  %v2071_v8 = vmul.f32 %v2883_v54, %v2070_v59 }
 0x2ed   : > { %2157 = vst [vmem:[%s3965_s3 + $0x60] sm:$0xff] %v2141_v6  ;;  %v2072_v14 = vadd.f32 %v2883_v54, %v2071_v8 }
 0x2ee   : > { %v2885_v13 = vpop.eup %2884 }
 0x2ef   : > { %v2887_v49 = vpop.eup %2886  ;;  %v2084_v38 = vmul.f32 %v2885_v13, %v1871_v57  ;;  %v2076_v60 = vsel %vm2075_vm7, %v2883_v54, %v2072_v14  ;;  %vm2089_vm9 = vweird.f32 %v2885_v13 }
 0x2f0   : > { %v1872_v34 = vadd.f32 1.0, %v2887_v49  ;;  %v2081_v39 = vsel %vm2078_vm8, %v2080_v22, %v2076_v60  ;;  %vm2090_vm11 = vmor %vm2088_vm10, %vm2089_vm9 }
 0x2f1   : > { %v2085_v52 = vsub.f32 1.0, %v2084_v38  ;;  %v2142_v44 = vmul.f32 %v2126_v20, %v2081_v39 }
 0x2f2   : > { %2888 = vrcp.f32 %v1872_v34  ;;  %v2109_v24 = vand.u32 2147483648, %v1872_v34  ;;  %v2107_v58 = vand.u32 2147483647, %v1872_v34  ;;  %vm2103_vm14 = vweird.f32 %v1872_v34 }
 0x2f3   : > { %v2086_v35 = vmul.f32 %v2885_v13, %v2085_v52  ;;  %2158 = vst [vmem:[%s3965_s3 + $0x68] sm:$0xff] %v2142_v44 }
 0x2f4   : > { %v2110_v3 = vor.u32 1.1754944e-38, %v2109_v24  ;;  %vm2108_vm0 = vcmp.eq.f32.partialorder %v2107_v58, 8.507059e+37 }
 0x2f5   : > { %v2087_v37 = vadd.f32 %v2885_v13, %v2086_v35 }
 0x2f7   : > { %v2091_v7 = vsel %vm2090_vm11, %v2885_v13, %v2087_v37 }
 0x2f8   : > { %v2889_v41 = vpop.eup %2888  ;;  %v2096_v50 = vsel %vm2093_vm12, %v2095_v16, %v2091_v7 }
 0x2f9   : > { %v2143_v51 = vmul.f32 %v2127_v61, %v2096_v50  ;;  %v2099_v33 = vmul.f32 %v2889_v41, %v1872_v34  ;;  %vm2104_vm13 = vweird.f32 %v2889_v41 }
 0x2fa   : > { %vm2105_vm15 = vmor %vm2103_vm14, %vm2104_vm13 }
 0x2fb   : > { %2159 = vst [vmem:[%s3965_s3 + $0x70] sm:$0xff] %v2143_v51  ;;  %v2100_v27 = vsub.f32 1.0, %v2099_v33 }
 0x2fd   : > { %v2101_v30 = vmul.f32 %v2889_v41, %v2100_v27 }
 0x2ff   : > { %v2102_v45 = vadd.f32 %v2889_v41, %v2101_v30 }
 0x301   : > { %v2106_v21 = vsel %vm2105_vm15, %v2889_v41, %v2102_v45 }
 0x302   : > { %v2111_v10 = vsel %vm2108_vm0, %v2110_v3, %v2106_v21 }
 0x303   : > { %v2144_v32 = vmul.f32 %v2128_v18, %v2111_v10 }
 0x305   : > { %2160 = vst [vmem:[%s3965_s3 + $0x78] sm:$0xff] %v2144_v32 }
 0x306   : > { %3097 = shalt.err (!%p3094_p10)
}
 0x307   : > { %s3163_s25 = smov 128   ;;  %s3164_s6 = smov 8  }
 0x308   : > { %2712 = dma.vmem_to_hbm [thread:$0]  (%p3304_p3), %s2175_s21, 2048, %s2177_s14, %s2162_s13, %s3163_s25, %s3163_s25, %s3164_s6  }
 0x309 PF: > { %p2747_p11 = scmp.ge.s32.totalorder %s3152_s12, 2  ;;  %s2191_s23 = sand.u32 1, %s3140_s30  }
 0x30a   : > { %s2192_s2 = scalar_lea.sflag [#allocation4], %s2191_s23 }
 0x30b   : > { %p2735_p12 = pnand %p2747_p11, %p3250_p6 }
 0x30d   : > { %p2736_p13 = pneg %p2735_p12 }
 0x30f   : > { %3135 = dma.done.wait (%p2736_p13), %s2192_s2, 2048  }
 0x310   : > { %3137 = vsyncadd (%p2736_p13), %s2192_s2, 4294965248  ;;  %s4072_s12 = sld [smem:[#allocation21_spill]]  ;;  %s4075_s30 = smov %s3144_s10 }
 0x311   : > { %s4073_s22 = sld [smem:[#allocation20_spill]] }
 0x312   : > { %s4074_s11 = sld [smem:[#allocation22_spill]] }
 0x316   : > { %p27_p0 = scmp.ge.s32.totalorder %s4072_s12, 6  }
 0x317   : > { %s4076_s10 = smov %s4073_s22 }
 0x318   :  { %29 = sbr.rel (!%p27_p0) target bundleno = 15 (0xf), region = 130 }
 0x31d   :  { %2198 = vsyncpa [#allocation3], 1 }
 0x31e   :  { %2200 = vsyncpa [#allocation3 + $0x1], 1 }
 0x31f   :  { %2201 = vsyncpa [#allocation6], 1 }
 0x320   :  { %2203 = vsyncpa [#allocation6 + $0x1], 1 }
 0x321   :  { %2204 = vsyncpa [#allocation9], 1 }
 0x322   :  { %2205 = vsyncpa [#allocation12], 1 }
 0x323   :  { %2206 = vsyncpa [#allocation4], 1 }
 0x324   :  { %2208 = vsyncpa [#allocation4 + $0x1], 1 }

</bundles_post_ra>
